<compile_context>
chip_gen: v6e
topology: v6e:2x2x1
jax: 0.10.0
libtpu: 0.0.40
codegen_flags: <defaults>
</compile_context>

<pallas_src>
import jax
import jax.numpy as jnp
from jax import lax
from jax.experimental import pallas as pl
from jax.experimental.pallas import tpu as pltpu


# ----------------------------------------------------------------------------
# Fused Pallas kernel: match + ratio test + gather + unproject + weighted sums
# ----------------------------------------------------------------------------
def _aligner_kernel(kinv_ref,   # SMEM (b_pad*9,) f32   scalar-prefetched K^-1 (flat)
                    d0t_ref,    # (blk, D, N) bf16      unit-norm image-0 desc, D-major
                    d1_ref,     # (blk, N, D) bf16      unit-norm image-1 desc
                    pts0_ref,   # (blk, 8, N) f32       rows: x0,y0,dep0(acF),valid0(acT),0..
                    pts1_ref,   # (blk, 8, N) f32       rows: x1,y1,dep1(acF),valid1(acT),0..
                    out_ref):   # (blk, 16, N) f32      xyz0(3),xyz1(3),kpts1g(2),conf,w,stats,0..
    blk = d0t_ref.shape[0]
    n_kp1 = d1_ref.shape[1]
    n_lanes = out_ref.shape[2]
    base = pl.program_id(0) * blk
    big = jnp.float32(1e9)

    def body(b, carry):
        bg = base + b

        # ---- cosine similarity on the MXU (pre-normalized bf16, f32 acc) ----
        sim = lax.dot_general(d1_ref[b], d0t_ref[b], (((1,), (0,)), ((), ())),
                              preferred_element_type=jnp.float32)     # (N1, N0)

        # one (8, N1) -> (N1, 8) transpose gives x1/y1/dep1/valid1 as columns
        p1t = jnp.transpose(pts1_ref[b])                              # (N1, 8)
        valid1 = p1t[:, 3:4]                                          # (N1, 1)

        # invalid image-1 keypoints can never be picked
        dist = jnp.where(valid1 > 0.0, 1.0 - sim, big)                # (N1, N0)

        # ---- ratio test: reductions along sublanes -> (1, N0) lane-dense ----
        sub = lax.broadcasted_iota(jnp.int32, dist.shape, 0)
        d1st = jnp.min(dist, axis=0, keepdims=True)                   # (1, N0)
        idx = jnp.min(jnp.where(dist <= d1st, sub, n_kp1),
                      axis=0, keepdims=True)                          # (1, N0) int32
        onehot = sub == idx                                           # (N1, N0) bool
        d2nd = jnp.min(jnp.where(onehot, big, dist), axis=0, keepdims=True)

        pts0 = pts0_ref[b]                                            # (8, N0)
        ratio = d1st / jnp.maximum(d2nd, 1e-9)
        conf = jnp.clip(1.0 - ratio, 0.0, 1.0)
        conf = conf * pts0[3:4, :]                                    # image-0 validity (0/1)
        conf = jnp.where(d1st < big * 0.5, conf, 0.0)                 # no valid column at all

        # ---- exact f32 gather of matched image-1 x/y/depth ----
        onef = onehot.astype(jnp.float32)
        gx = jnp.sum(onef * p1t[:, 0:1], axis=0, keepdims=True)       # (1, N0)
        gy = jnp.sum(onef * p1t[:, 1:2], axis=0, keepdims=True)
        gd = jnp.sum(onef * p1t[:, 2:3], axis=0, keepdims=True)

        dep0 = pts0[2:3, :]
        valid3d = ((dep0 > 0.0) & (gd > 0.0)).astype(jnp.float32)
        w = conf * valid3d

        # ---- unprojection: xyz_j = sum_k Kinv[j,k] * p_k, Kinv from SMEM ----
        p0 = (pts0[0:1, :] * dep0, pts0[1:2, :] * dep0, dep0)
        p1 = (gx * gd, gy * gd, gd)
        xyz0, xyz1 = [], []
        koff = bg * 9
        for j in range(3):
            k0 = kinv_ref[koff + 3 * j + 0]
            k1 = kinv_ref[koff + 3 * j + 1]
            k2 = kinv_ref[koff + 3 * j + 2]
            xyz0.append(k0 * p0[0] + k1 * p0[1] + k2 * p0[2])
            xyz1.append(k0 * p1[0] + k1 * p1[1] + k2 * p1[2])

        # ---- uncentered weighted sums: 16 independent lane reductions ----
        # M_ij = sum w*x0_i*x1_j, s0_i = sum w*x0_i, s1_j = sum w*x1_j, wsum.
        # Centroids / covariance are finished in the wrapper (scalar math).
        wx0 = [w * xyz0[j] for j in range(3)]
        msum = [jnp.sum(wx0[i] * xyz1[j], axis=1, keepdims=True)
                for i in range(3) for j in range(3)]                  # 9 x (1, 1)
        s0 = [jnp.sum(wx0[j], axis=1, keepdims=True) for j in range(3)]
        s1 = [jnp.sum(w * xyz1[j], axis=1, keepdims=True) for j in range(3)]
        wsum = jnp.sum(w, axis=1, keepdims=True)

        stats = jnp.concatenate(msum + s0 + s1 + [wsum], axis=1)      # (1, 16)
        if n_lanes > 16:
            stats = jnp.concatenate(
                [stats, jnp.zeros((1, n_lanes - 16), jnp.float32)], axis=1)

        # full 16-sublane tile -> unmasked store
        out_ref[b] = jnp.concatenate(
            xyz0 + xyz1 + [gx, gy, conf, w, stats,
                           jnp.zeros((5, n_lanes), jnp.float32)], axis=0)
        return carry

    # unroll=2: overlap image b's MXU matmul with image b-1's XLU reduction tail
    lax.fori_loop(0, blk, body, jnp.int32(0), unroll=min(2, blk))


def _choose_block(batch):
    # Big enough to amortize the ~0.35 us per-grid-step overhead, small enough
    # to keep the grid length >= 2 (both v7x TensorCores busy) and the
    # double-buffered working set tiny (<~3 MiB) on every generation.
    return max(1, min(16, -(-batch // 2)))


def match_and_align(kinv9, d0t, d1, pts0, pts1):
    """One fused pallas_call over the batch (blk images per grid step)."""
    B, D, N = d0t.shape
    blk = _choose_block(B)
    grid = -(-B // blk)
    if grid > 1 and grid % 2:
        grid += 1                       # even grid keeps both v7x cores busy
    b_pad = grid * blk

    if b_pad != B:
        pad = b_pad - B

        def padb(x):
            return jnp.concatenate(
                [x, jnp.zeros((pad,) + x.shape[1:], x.dtype)], axis=0)

        d0t, d1, pts0, pts1 = padb(d0t), padb(d1), padb(pts0), padb(pts1)
        kinv9 = jnp.concatenate([kinv9, jnp.zeros((pad, 9), jnp.float32)], axis=0)

    # flat 1-D SMEM prefetch avoids the (B, 9) -> (B, 128) SMEM lane padding
    kinv_flat = kinv9.reshape(-1)

    grid_spec = pltpu.PrefetchScalarGridSpec(
        num_scalar_prefetch=1,               # K^-1 lives in SMEM
        grid=(grid,),
        in_specs=[pl.BlockSpec((blk, D, N), lambda i, kinv: (i, 0, 0)),
                  pl.BlockSpec((blk, N, D), lambda i, kinv: (i, 0, 0)),
                  pl.BlockSpec((blk, 8, N), lambda i, kinv: (i, 0, 0)),
                  pl.BlockSpec((blk, 8, N), lambda i, kinv: (i, 0, 0))],
        out_specs=pl.BlockSpec((blk, 16, N), lambda i, kinv: (i, 0, 0)))

    out = pl.pallas_call(
        _aligner_kernel,
        out_shape=jax.ShapeDtypeStruct((b_pad, 16, N), jnp.float32),
        grid_spec=grid_spec,
        compiler_params=pltpu.CompilerParams(
            dimension_semantics=("parallel",),
            vmem_limit_bytes=32 * 1024 * 1024),   # safe on v5e's 16 MiB default
    )(kinv_flat, d0t, d1, pts0, pts1)
    return out[:B]


# ----------------------------------------------------------------------------
# JAX glue
# ----------------------------------------------------------------------------
def nearest_sample(img, kpts, align_corners):
    """grid_sample(..., mode='nearest') equivalent for pixel-space keypoints.

    pixel_to_ndc is assumed to be p_ndc = 2*p/(S-1) - 1; out-of-range indices
    are clamped instead of zero-padded (minor divergence from padding_mode='zeros').
    """
    C, H, W = img.shape
    x = kpts[:, 0]
    y = kpts[:, 1]
    if align_corners:
        xi = jnp.round(x)
        yi = jnp.round(y)
    else:
        xi = jnp.round(x * W / (W - 1) - 0.5)
        yi = jnp.round(y * H / (H - 1) - 0.5)
    xi = jnp.clip(xi, 0, W - 1).astype(jnp.int32)
    yi = jnp.clip(yi, 0, H - 1).astype(jnp.int32)
    return img[:, yi, xi]                      # (C, N)


def _kabsch(cov, c0, c1, enough):
    """Weighted Procrustes from the covariance produced by the kernel."""
    U, _, Vt = jnp.linalg.svd(cov)
    V = Vt.T
    det = jnp.linalg.det(V @ U.T)
    d = jnp.where(jnp.abs(det) < 1e-12, 1.0, jnp.sign(det))
    Dm = jnp.diag(jnp.stack([jnp.ones_like(d), jnp.ones_like(d), d]))
    R = V @ Dm @ U.T
    t = c1 - R @ c0
    Rt = jnp.eye(4, dtype=cov.dtype)
    Rt = Rt.at[:3, :3].set(R).at[:3, 3].set(t)
    return jnp.where(enough, Rt, jnp.eye(4, dtype=cov.dtype))


class GenericAlignerPallas:
    """Functional re-implementation of GenericAligner.forward."""

    def __init__(self, key, desc_dim=128):
        self.desc_dim = desc_dim
        # deterministic stand-in for the feature descriptor network
        self.proj = 0.1 * jax.random.normal(key, (5, desc_dim), jnp.float32)

    def get_descriptors(self, rgb, kpts):
        B, C, H, W = rgb.shape
        sampled = jax.vmap(lambda im, kp: nearest_sample(im, kp, True))(rgb, kpts)
        sampled = jnp.transpose(sampled, (0, 2, 1))                    # (B, N, 3)
        xy_norm = kpts / jnp.array([W - 1.0, H - 1.0], jnp.float32)
        feats = jnp.concatenate([sampled, xy_norm], axis=-1)           # (B, N, 5)
        desc = feats @ self.proj                                       # (B, N, D)
        # pre-normalize for cosine similarity (fuses into this mem-bound op so
        # the kernel carries no f32 descriptor temporaries / norm reductions)
        desc = desc * lax.rsqrt(jnp.sum(desc * desc, axis=-1, keepdims=True) + 1e-8)
        return desc

    def forward(self, rgbs, K, deps, kpts0, kpts1):
        rgbs_0 = rgbs[0] * 0.5 + 0.5
        rgbs_1 = rgbs[1] * 0.5 + 0.5
        dep0, dep1 = deps
        B = rgbs_0.shape[0]
        N = kpts0.shape[1]

        desc0 = self.get_descriptors(rgbs_0, kpts0)                    # unit-norm f32
        desc1 = self.get_descriptors(rgbs_1, kpts1)

        # filter_invalid_depth (align_corners=True nearest); mask instead of filter
        kdep0_t = jax.vmap(lambda d, kp: nearest_sample(d, kp, True))(dep0, kpts0)[:, 0, :]
        kdep1_t = jax.vmap(lambda d, kp: nearest_sample(d, kp, True))(dep1, kpts1)[:, 0, :]
        valid0 = (kdep0_t > 0).astype(jnp.float32)
        valid1 = (kdep1_t > 0).astype(jnp.float32)

        # keypoints_to_3d depth sampling (align_corners=False nearest) at ALL
        # keypoints — the kernel gathers the matched image-1 entries itself.
        kdep0_f = jax.vmap(lambda d, kp: nearest_sample(d, kp, False))(dep0, kpts0)[:, 0, :]
        kdep1_f = jax.vmap(lambda d, kp: nearest_sample(d, kp, False))(dep1, kpts1)[:, 0, :]

        # lane-dense packed kernel inputs (valid1 packed into pts1 row 3; the
        # old (B, N, 1) mask input — ~half of all input DMA bytes — is gone)
        pts0 = jnp.concatenate(
            [jnp.stack([kpts0[..., 0], kpts0[..., 1], kdep0_f, valid0], axis=1),
             jnp.zeros((B, 4, N), jnp.float32)], axis=1)               # (B, 8, N)
        pts1 = jnp.concatenate(
            [jnp.stack([kpts1[..., 0], kpts1[..., 1], kdep1_f, valid1], axis=1),
             jnp.zeros((B, 4, N), jnp.float32)], axis=1)               # (B, 8, N)

        d0t = jnp.swapaxes(desc0, 1, 2).astype(jnp.bfloat16)           # (B, D, N)
        d1 = desc1.astype(jnp.bfloat16)                                # (B, N, D)
        kinv9 = jnp.linalg.inv(K).reshape(B, 9)

        out = match_and_align(kinv9, d0t, d1, pts0, pts1)              # (B, 16, N)

        xyz0 = jnp.swapaxes(out[:, 0:3, :], 1, 2)                      # (B, N, 3)
        xyz1 = jnp.swapaxes(out[:, 3:6, :], 1, 2)                      # (B, N, 3)
        mkpts_0 = kpts0
        mkpts_1 = jnp.swapaxes(out[:, 6:8, :], 1, 2)                   # (B, N, 2)
        mconf = out[:, 8, :]                                           # (B, N)
        w = out[:, 9, :]                                               # (B, N)

        # finish centroids / covariance from the kernel's uncentered sums
        stats = out[:, 10, 0:16]                                       # (B, 16)
        M = stats[:, 0:9].reshape(B, 3, 3)
        s0 = stats[:, 9:12]
        s1 = stats[:, 12:15]
        wsum = stats[:, 15]
        wsafe = jnp.maximum(wsum, 1e-8)
        c0 = s0 / wsafe[:, None]
        c1 = s1 / wsafe[:, None]
        cov = M - s0[:, :, None] * s1[:, None, :] / wsafe[:, None, None]

        num_corr = jnp.sum((mconf > 0).astype(jnp.float32), axis=1)    # (B,)
        enough = num_corr > 5
        valid_out = jnp.ones((B,), jnp.float32)

        Rt = jax.vmap(_kabsch)(cov, c0, c1, enough)                    # (B, 4, 4)
        eye = jnp.broadcast_to(jnp.eye(4, dtype=Rt.dtype), (B, 4, 4))
        Rts_0 = jnp.stack([eye, Rt], axis=1)                           # (B, 2, 4, 4)

        corr3d_i = [xyz0[i] for i in range(B)]
        corr3d_j = [xyz1[i] for i in range(B)]
        corr2d_i = [mkpts_0[i] for i in range(B)]
        corr2d_j = [mkpts_1[i] for i in range(B)]
        corr2d_w = [w[i] for i in range(B)]

        output = {
            "Rts_0": Rts_0,
            "pw_corr_0": {(0, 1): (corr3d_i, corr3d_j, corr2d_w)},
            "num_corr": num_corr,
            "loss": num_corr,
            "valid": valid_out,
            "corr2d": {(0, 1): (corr2d_i, corr2d_j, corr2d_w)},
        }
        return output


if __name__ == "__main__":
    key = jax.random.PRNGKey(0)
    k_proj, k_r0, k_r1, k_d0, k_d1, k_m0, k_m1, k_kp0, k_kp1 = jax.random.split(key, 9)

    B, C, H, W = 2, 3, 16, 16
    N, D = 128, 128

    rgbs = [jax.random.normal(k_r0, (B, C, H, W), jnp.float32),
            jax.random.normal(k_r1, (B, C, H, W), jnp.float32)]

    def make_depth(kd, km):
        d = jax.random.uniform(kd, (B, 1, H, W), jnp.float32, 0.5, 2.0)
        mask = jax.random.bernoulli(km, 0.2, (B, 1, H, W))
        return jnp.where(mask, 0.0, d)

    deps = [make_depth(k_d0, k_m0), make_depth(k_d1, k_m1)]

    K = jnp.broadcast_to(
        jnp.array([[10.0, 0.0, W / 2.0],
                   [0.0, 10.0, H / 2.0],
                   [0.0, 0.0, 1.0]], jnp.float32), (B, 3, 3))

    kpts0 = jax.random.uniform(k_kp0, (B, N, 2), jnp.float32) * jnp.array(
        [W - 1.0, H - 1.0], jnp.float32)
    kpts1 = jax.random.uniform(k_kp1, (B, N, 2), jnp.float32) * jnp.array(
        [W - 1.0, H - 1.0], jnp.float32)

    model = GenericAlignerPallas(k_proj, desc_dim=D)
    out = model.forward(rgbs, K, deps, kpts0, kpts1)

    jax.block_until_ready(out["Rts_0"])
    jax.block_until_ready(out["num_corr"])
    jax.block_until_ready(out["pw_corr_0"][(0, 1)][0][0])
    print("KERNEL_OK")
</pallas_src>

<mosaic_0001>
module attributes {stable_mosaic.version = 11 : i64} {
  func.func @_aligner_kernel(%arg0: i32, %arg1: memref<18xf32, #tpu.memory_space<smem>>, %arg2: memref<1x128x128xbf16, #tpu.memory_space<vmem>>, %arg3: memref<1x128x128xbf16, #tpu.memory_space<vmem>>, %arg4: memref<1x8x128xf32, #tpu.memory_space<vmem>>, %arg5: memref<1x8x128xf32, #tpu.memory_space<vmem>>, %arg6: memref<1x16x128xf32, #tpu.memory_space<vmem>>) attributes {dimension_semantics = [#tpu.dimension_semantics<parallel>], iteration_bounds = array<i64: 2>, scalar_prefetch = 1 : i64, scratch_operands = 0 : i64, tpu.core_type = #tpu.core_type<tc>, window_params = [{transform_indices = @transform_0, window_bounds = array<i64: 1, 128, 128>}, {transform_indices = @transform_1, window_bounds = array<i64: 1, 128, 128>}, {transform_indices = @transform_2, window_bounds = array<i64: 1, 8, 128>}, {transform_indices = @transform_3, window_bounds = array<i64: 1, 8, 128>}, {transform_indices = @transform_4, window_bounds = array<i64: 1, 16, 128>}]} {
    %c1_i32 = arith.constant 1 : i32
    %0 = arith.muli %arg0, %c1_i32 : i32
    %cst = arith.constant 1.000000e+09 : f32
    %c0_i32 = arith.constant 0 : i32
    %1 = arith.addi %0, %c0_i32 : i32
    %2 = arith.index_cast %c0_i32 : i32 to index
    %c0 = arith.constant 0 : index
    %c0_0 = arith.constant 0 : index
    %3 = vector.load %arg3[%2, %c0, %c0_0] : memref<1x128x128xbf16, #tpu.memory_space<vmem>>, vector<1x128x128xbf16>
    %4 = vector.shape_cast %3 : vector<1x128x128xbf16> to vector<128x128xbf16>
    %5 = arith.index_cast %c0_i32 : i32 to index
    %c0_1 = arith.constant 0 : index
    %c0_2 = arith.constant 0 : index
    %6 = vector.load %arg2[%5, %c0_1, %c0_2] : memref<1x128x128xbf16, #tpu.memory_space<vmem>>, vector<1x128x128xbf16>
    %7 = vector.shape_cast %6 : vector<1x128x128xbf16> to vector<128x128xbf16>
    %cst_3 = arith.constant dense<0.000000e+00> : vector<128x128xf32>
    %8 = tpu.matmul %4, %7, %cst_3 {dimension_numbers = #tpu.dot_dimension_numbers<[1], [0], [0], [1], [0, 0, 1, 1], [], []>} : vector<128x128xbf16>, vector<128x128xbf16>, vector<128x128xf32> -> vector<128x128xf32>
    %9 = arith.index_cast %c0_i32 : i32 to index
    %c0_4 = arith.constant 0 : index
    %c0_5 = arith.constant 0 : index
    %10 = vector.load %arg5[%9, %c0_4, %c0_5] : memref<1x8x128xf32, #tpu.memory_space<vmem>>, vector<1x8x128xf32>
    %11 = vector.shape_cast %10 : vector<1x8x128xf32> to vector<8x128xf32>
    %12 = tpu.transpose %11, [1, 0] : vector<8x128xf32> -> vector<128x8xf32>
    %13 = vector.extract_strided_slice %12 {offsets = [0, 3], sizes = [128, 1], strides = [1, 1]} : vector<128x8xf32> to vector<128x1xf32>
    %cst_6 = arith.constant 0.000000e+00 : f32
    %14 = vector.broadcast %cst_6 : f32 to vector<128x1xf32>
    %15 = arith.cmpf ogt, %13, %14 : vector<128x1xf32>
    %cst_7 = arith.constant 1.000000e+00 : f32
    %16 = vector.broadcast %cst_7 : f32 to vector<128x128xf32>
    %17 = arith.subf %16, %8 : vector<128x128xf32>
    %18 = vector.shape_cast %15 : vector<128x1xi1> to vector<128x1xi1>
    %19 = vector.broadcast %18 : vector<128x1xi1> to vector<128x128xi1>
    %20 = vector.broadcast %cst : f32 to vector<128x128xf32>
    %21 = arith.select %19, %17, %20 : vector<128x128xi1>, vector<128x128xf32>
    %22 = tpu.iota {dimensions = array<i32: 0>} : vector<128x128xi32>
    %cst_8 = arith.constant dense<0x7F800000> : vector<128xf32>
    %23 = vector.multi_reduction <minimumf>, %21, %cst_8 [0] : vector<128x128xf32> to vector<128xf32>
    %24 = vector.shape_cast %23 : vector<128xf32> to vector<1x128xf32>
    %25 = vector.broadcast %24 : vector<1x128xf32> to vector<128x128xf32>
    %26 = arith.cmpf ole, %21, %25 : vector<128x128xf32>
    %c128_i32 = arith.constant 128 : i32
    %27 = vector.broadcast %c128_i32 : i32 to vector<128x128xi32>
    %28 = arith.select %26, %22, %27 : vector<128x128xi1>, vector<128x128xi32>
    %cst_9 = arith.constant dense<2147483647> : vector<128xi32>
    %29 = vector.multi_reduction <minsi>, %28, %cst_9 [0] : vector<128x128xi32> to vector<128xi32>
    %30 = vector.shape_cast %29 : vector<128xi32> to vector<1x128xi32>
    %31 = vector.broadcast %30 : vector<1x128xi32> to vector<128x128xi32>
    %32 = arith.cmpi eq, %22, %31 : vector<128x128xi32>
    %33 = vector.broadcast %cst : f32 to vector<128x128xf32>
    %34 = arith.select %32, %33, %21 : vector<128x128xi1>, vector<128x128xf32>
    %cst_10 = arith.constant dense<0x7F800000> : vector<128xf32>
    %35 = vector.multi_reduction <minimumf>, %34, %cst_10 [0] : vector<128x128xf32> to vector<128xf32>
    %36 = vector.shape_cast %35 : vector<128xf32> to vector<1x128xf32>
    %37 = arith.index_cast %c0_i32 : i32 to index
    %c0_11 = arith.constant 0 : index
    %c0_12 = arith.constant 0 : index
    %38 = vector.load %arg4[%37, %c0_11, %c0_12] : memref<1x8x128xf32, #tpu.memory_space<vmem>>, vector<1x8x128xf32>
    %39 = vector.shape_cast %38 : vector<1x8x128xf32> to vector<8x128xf32>
    %cst_13 = arith.constant 9.99999971E-10 : f32
    %40 = vector.broadcast %cst_13 : f32 to vector<1x128xf32>
    %41 = arith.maximumf %36, %40 : vector<1x128xf32>
    %42 = arith.divf %24, %41 : vector<1x128xf32>
    %cst_14 = arith.constant 1.000000e+00 : f32
    %43 = vector.broadcast %cst_14 : f32 to vector<1x128xf32>
    %44 = arith.subf %43, %42 : vector<1x128xf32>
    %cst_15 = arith.constant 0.000000e+00 : f32
    %cst_16 = arith.constant 1.000000e+00 : f32
    %45 = vector.broadcast %cst_15 : f32 to vector<1x128xf32>
    %46 = arith.maximumf %45, %44 : vector<1x128xf32>
    %47 = vector.broadcast %cst_16 : f32 to vector<1x128xf32>
    %48 = arith.minimumf %47, %46 : vector<1x128xf32>
    %49 = vector.extract_strided_slice %39 {offsets = [3, 0], sizes = [1, 128], strides = [1, 1]} : vector<8x128xf32> to vector<1x128xf32>
    %50 = arith.mulf %48, %49 : vector<1x128xf32>
    %cst_17 = arith.constant 5.000000e-01 : f32
    %51 = arith.mulf %cst, %cst_17 : f32
    %52 = vector.broadcast %51 : f32 to vector<1x128xf32>
    %53 = arith.cmpf olt, %24, %52 : vector<1x128xf32>
    %cst_18 = arith.constant 0.000000e+00 : f32
    %54 = vector.broadcast %cst_18 : f32 to vector<1x128xf32>
    %55 = arith.select %53, %50, %54 : vector<1x128xi1>, vector<1x128xf32>
    %56 = arith.extui %32 : vector<128x128xi1> to vector<128x128xi32>
    %57 = arith.sitofp %56 : vector<128x128xi32> to vector<128x128xf32>
    %58 = vector.extract_strided_slice %12 {offsets = [0, 0], sizes = [128, 1], strides = [1, 1]} : vector<128x8xf32> to vector<128x1xf32>
    %59 = vector.broadcast %58 : vector<128x1xf32> to vector<128x128xf32>
    %60 = arith.mulf %57, %59 : vector<128x128xf32>
    %cst_19 = arith.constant dense<0.000000e+00> : vector<128xf32>
    %61 = vector.multi_reduction <add>, %60, %cst_19 [0] : vector<128x128xf32> to vector<128xf32>
    %62 = vector.shape_cast %61 : vector<128xf32> to vector<1x128xf32>
    %63 = vector.extract_strided_slice %12 {offsets = [0, 1], sizes = [128, 1], strides = [1, 1]} : vector<128x8xf32> to vector<128x1xf32>
    %64 = vector.broadcast %63 : vector<128x1xf32> to vector<128x128xf32>
    %65 = arith.mulf %57, %64 : vector<128x128xf32>
    %cst_20 = arith.constant dense<0.000000e+00> : vector<128xf32>
    %66 = vector.multi_reduction <add>, %65, %cst_20 [0] : vector<128x128xf32> to vector<128xf32>
    %67 = vector.shape_cast %66 : vector<128xf32> to vector<1x128xf32>
    %68 = vector.extract_strided_slice %12 {offsets = [0, 2], sizes = [128, 1], strides = [1, 1]} : vector<128x8xf32> to vector<128x1xf32>
    %69 = vector.broadcast %68 : vector<128x1xf32> to vector<128x128xf32>
    %70 = arith.mulf %57, %69 : vector<128x128xf32>
    %cst_21 = arith.constant dense<0.000000e+00> : vector<128xf32>
    %71 = vector.multi_reduction <add>, %70, %cst_21 [0] : vector<128x128xf32> to vector<128xf32>
    %72 = vector.shape_cast %71 : vector<128xf32> to vector<1x128xf32>
    %73 = vector.extract_strided_slice %39 {offsets = [2, 0], sizes = [1, 128], strides = [1, 1]} : vector<8x128xf32> to vector<1x128xf32>
    %cst_22 = arith.constant 0.000000e+00 : f32
    %74 = vector.broadcast %cst_22 : f32 to vector<1x128xf32>
    %75 = arith.cmpf ogt, %73, %74 : vector<1x128xf32>
    %cst_23 = arith.constant 0.000000e+00 : f32
    %76 = vector.broadcast %cst_23 : f32 to vector<1x128xf32>
    %77 = arith.cmpf ogt, %72, %76 : vector<1x128xf32>
    %78 = arith.andi %75, %77 : vector<1x128xi1>
    %79 = arith.extui %78 : vector<1x128xi1> to vector<1x128xi32>
    %80 = arith.sitofp %79 : vector<1x128xi32> to vector<1x128xf32>
    %81 = arith.mulf %55, %80 : vector<1x128xf32>
    %82 = vector.extract_strided_slice %39 {offsets = [0, 0], sizes = [1, 128], strides = [1, 1]} : vector<8x128xf32> to vector<1x128xf32>
    %83 = arith.mulf %82, %73 : vector<1x128xf32>
    %84 = vector.extract_strided_slice %39 {offsets = [1, 0], sizes = [1, 128], strides = [1, 1]} : vector<8x128xf32> to vector<1x128xf32>
    %85 = arith.mulf %84, %73 : vector<1x128xf32>
    %86 = arith.mulf %62, %72 : vector<1x128xf32>
    %87 = arith.mulf %67, %72 : vector<1x128xf32>
    %c9_i32 = arith.constant 9 : i32
    %88 = arith.muli %1, %c9_i32 : i32
    %c0_i32_24 = arith.constant 0 : i32
    %89 = arith.addi %88, %c0_i32_24 : i32
    %c0_i32_25 = arith.constant 0 : i32
    %90 = arith.addi %89, %c0_i32_25 : i32
    %91 = arith.index_cast %90 : i32 to index
    %92 = memref.load %arg1[%91] : memref<18xf32, #tpu.memory_space<smem>>
    %c0_i32_26 = arith.constant 0 : i32
    %93 = arith.addi %88, %c0_i32_26 : i32
    %c1_i32_27 = arith.constant 1 : i32
    %94 = arith.addi %93, %c1_i32_27 : i32
    %95 = arith.index_cast %94 : i32 to index
    %96 = memref.load %arg1[%95] : memref<18xf32, #tpu.memory_space<smem>>
    %c0_i32_28 = arith.constant 0 : i32
    %97 = arith.addi %88, %c0_i32_28 : i32
    %c2_i32 = arith.constant 2 : i32
    %98 = arith.addi %97, %c2_i32 : i32
    %99 = arith.index_cast %98 : i32 to index
    %100 = memref.load %arg1[%99] : memref<18xf32, #tpu.memory_space<smem>>
    %101 = vector.broadcast %92 : f32 to vector<1x128xf32>
    %102 = arith.mulf %101, %83 : vector<1x128xf32>
    %103 = vector.broadcast %96 : f32 to vector<1x128xf32>
    %104 = arith.mulf %103, %85 : vector<1x128xf32>
    %105 = arith.addf %102, %104 : vector<1x128xf32>
    %106 = vector.broadcast %100 : f32 to vector<1x128xf32>
    %107 = arith.mulf %106, %73 : vector<1x128xf32>
    %108 = arith.addf %105, %107 : vector<1x128xf32>
    %109 = vector.broadcast %92 : f32 to vector<1x128xf32>
    %110 = arith.mulf %109, %86 : vector<1x128xf32>
    %111 = vector.broadcast %96 : f32 to vector<1x128xf32>
    %112 = arith.mulf %111, %87 : vector<1x128xf32>
    %113 = arith.addf %110, %112 : vector<1x128xf32>
    %114 = vector.broadcast %100 : f32 to vector<1x128xf32>
    %115 = arith.mulf %114, %72 : vector<1x128xf32>
    %116 = arith.addf %113, %115 : vector<1x128xf32>
    %c3_i32 = arith.constant 3 : i32
    %117 = arith.addi %88, %c3_i32 : i32
    %c0_i32_29 = arith.constant 0 : i32
    %118 = arith.addi %117, %c0_i32_29 : i32
    %119 = arith.index_cast %118 : i32 to index
    %120 = memref.load %arg1[%119] : memref<18xf32, #tpu.memory_space<smem>>
    %c3_i32_30 = arith.constant 3 : i32
    %121 = arith.addi %88, %c3_i32_30 : i32
    %c1_i32_31 = arith.constant 1 : i32
    %122 = arith.addi %121, %c1_i32_31 : i32
    %123 = arith.index_cast %122 : i32 to index
    %124 = memref.load %arg1[%123] : memref<18xf32, #tpu.memory_space<smem>>
    %c3_i32_32 = arith.constant 3 : i32
    %125 = arith.addi %88, %c3_i32_32 : i32
    %c2_i32_33 = arith.constant 2 : i32
    %126 = arith.addi %125, %c2_i32_33 : i32
    %127 = arith.index_cast %126 : i32 to index
    %128 = memref.load %arg1[%127] : memref<18xf32, #tpu.memory_space<smem>>
    %129 = vector.broadcast %120 : f32 to vector<1x128xf32>
    %130 = arith.mulf %129, %83 : vector<1x128xf32>
    %131 = vector.broadcast %124 : f32 to vector<1x128xf32>
    %132 = arith.mulf %131, %85 : vector<1x128xf32>
    %133 = arith.addf %130, %132 : vector<1x128xf32>
    %134 = vector.broadcast %128 : f32 to vector<1x128xf32>
    %135 = arith.mulf %134, %73 : vector<1x128xf32>
    %136 = arith.addf %133, %135 : vector<1x128xf32>
    %137 = vector.broadcast %120 : f32 to vector<1x128xf32>
    %138 = arith.mulf %137, %86 : vector<1x128xf32>
    %139 = vector.broadcast %124 : f32 to vector<1x128xf32>
    %140 = arith.mulf %139, %87 : vector<1x128xf32>
    %141 = arith.addf %138, %140 : vector<1x128xf32>
    %142 = vector.broadcast %128 : f32 to vector<1x128xf32>
    %143 = arith.mulf %142, %72 : vector<1x128xf32>
    %144 = arith.addf %141, %143 : vector<1x128xf32>
    %c6_i32 = arith.constant 6 : i32
    %145 = arith.addi %88, %c6_i32 : i32
    %c0_i32_34 = arith.constant 0 : i32
    %146 = arith.addi %145, %c0_i32_34 : i32
    %147 = arith.index_cast %146 : i32 to index
    %148 = memref.load %arg1[%147] : memref<18xf32, #tpu.memory_space<smem>>
    %c6_i32_35 = arith.constant 6 : i32
    %149 = arith.addi %88, %c6_i32_35 : i32
    %c1_i32_36 = arith.constant 1 : i32
    %150 = arith.addi %149, %c1_i32_36 : i32
    %151 = arith.index_cast %150 : i32 to index
    %152 = memref.load %arg1[%151] : memref<18xf32, #tpu.memory_space<smem>>
    %c6_i32_37 = arith.constant 6 : i32
    %153 = arith.addi %88, %c6_i32_37 : i32
    %c2_i32_38 = arith.constant 2 : i32
    %154 = arith.addi %153, %c2_i32_38 : i32
    %155 = arith.index_cast %154 : i32 to index
    %156 = memref.load %arg1[%155] : memref<18xf32, #tpu.memory_space<smem>>
    %157 = vector.broadcast %148 : f32 to vector<1x128xf32>
    %158 = arith.mulf %157, %83 : vector<1x128xf32>
    %159 = vector.broadcast %152 : f32 to vector<1x128xf32>
    %160 = arith.mulf %159, %85 : vector<1x128xf32>
    %161 = arith.addf %158, %160 : vector<1x128xf32>
    %162 = vector.broadcast %156 : f32 to vector<1x128xf32>
    %163 = arith.mulf %162, %73 : vector<1x128xf32>
    %164 = arith.addf %161, %163 : vector<1x128xf32>
    %165 = vector.broadcast %148 : f32 to vector<1x128xf32>
    %166 = arith.mulf %165, %86 : vector<1x128xf32>
    %167 = vector.broadcast %152 : f32 to vector<1x128xf32>
    %168 = arith.mulf %167, %87 : vector<1x128xf32>
    %169 = arith.addf %166, %168 : vector<1x128xf32>
    %170 = vector.broadcast %156 : f32 to vector<1x128xf32>
    %171 = arith.mulf %170, %72 : vector<1x128xf32>
    %172 = arith.addf %169, %171 : vector<1x128xf32>
    %173 = arith.mulf %81, %108 : vector<1x128xf32>
    %174 = arith.mulf %81, %136 : vector<1x128xf32>
    %175 = arith.mulf %81, %164 : vector<1x128xf32>
    %176 = arith.mulf %173, %116 : vector<1x128xf32>
    %cst_39 = arith.constant dense<0.000000e+00> : vector<1xf32>
    %177 = vector.multi_reduction <add>, %176, %cst_39 [1] : vector<1x128xf32> to vector<1xf32>
    %178 = vector.shape_cast %177 : vector<1xf32> to vector<1x1xf32>
    %179 = arith.mulf %173, %144 : vector<1x128xf32>
    %cst_40 = arith.constant dense<0.000000e+00> : vector<1xf32>
    %180 = vector.multi_reduction <add>, %179, %cst_40 [1] : vector<1x128xf32> to vector<1xf32>
    %181 = vector.shape_cast %180 : vector<1xf32> to vector<1x1xf32>
    %182 = arith.mulf %173, %172 : vector<1x128xf32>
    %cst_41 = arith.constant dense<0.000000e+00> : vector<1xf32>
    %183 = vector.multi_reduction <add>, %182, %cst_41 [1] : vector<1x128xf32> to vector<1xf32>
    %184 = vector.shape_cast %183 : vector<1xf32> to vector<1x1xf32>
    %185 = arith.mulf %174, %116 : vector<1x128xf32>
    %cst_42 = arith.constant dense<0.000000e+00> : vector<1xf32>
    %186 = vector.multi_reduction <add>, %185, %cst_42 [1] : vector<1x128xf32> to vector<1xf32>
    %187 = vector.shape_cast %186 : vector<1xf32> to vector<1x1xf32>
    %188 = arith.mulf %174, %144 : vector<1x128xf32>
    %cst_43 = arith.constant dense<0.000000e+00> : vector<1xf32>
    %189 = vector.multi_reduction <add>, %188, %cst_43 [1] : vector<1x128xf32> to vector<1xf32>
    %190 = vector.shape_cast %189 : vector<1xf32> to vector<1x1xf32>
    %191 = arith.mulf %174, %172 : vector<1x128xf32>
    %cst_44 = arith.constant dense<0.000000e+00> : vector<1xf32>
    %192 = vector.multi_reduction <add>, %191, %cst_44 [1] : vector<1x128xf32> to vector<1xf32>
    %193 = vector.shape_cast %192 : vector<1xf32> to vector<1x1xf32>
    %194 = arith.mulf %175, %116 : vector<1x128xf32>
    %cst_45 = arith.constant dense<0.000000e+00> : vector<1xf32>
    %195 = vector.multi_reduction <add>, %194, %cst_45 [1] : vector<1x128xf32> to vector<1xf32>
    %196 = vector.shape_cast %195 : vector<1xf32> to vector<1x1xf32>
    %197 = arith.mulf %175, %144 : vector<1x128xf32>
    %cst_46 = arith.constant dense<0.000000e+00> : vector<1xf32>
    %198 = vector.multi_reduction <add>, %197, %cst_46 [1] : vector<1x128xf32> to vector<1xf32>
    %199 = vector.shape_cast %198 : vector<1xf32> to vector<1x1xf32>
    %200 = arith.mulf %175, %172 : vector<1x128xf32>
    %cst_47 = arith.constant dense<0.000000e+00> : vector<1xf32>
    %201 = vector.multi_reduction <add>, %200, %cst_47 [1] : vector<1x128xf32> to vector<1xf32>
    %202 = vector.shape_cast %201 : vector<1xf32> to vector<1x1xf32>
    %cst_48 = arith.constant dense<0.000000e+00> : vector<1xf32>
    %203 = vector.multi_reduction <add>, %173, %cst_48 [1] : vector<1x128xf32> to vector<1xf32>
    %204 = vector.shape_cast %203 : vector<1xf32> to vector<1x1xf32>
    %cst_49 = arith.constant dense<0.000000e+00> : vector<1xf32>
    %205 = vector.multi_reduction <add>, %174, %cst_49 [1] : vector<1x128xf32> to vector<1xf32>
    %206 = vector.shape_cast %205 : vector<1xf32> to vector<1x1xf32>
    %cst_50 = arith.constant dense<0.000000e+00> : vector<1xf32>
    %207 = vector.multi_reduction <add>, %175, %cst_50 [1] : vector<1x128xf32> to vector<1xf32>
    %208 = vector.shape_cast %207 : vector<1xf32> to vector<1x1xf32>
    %209 = arith.mulf %81, %116 : vector<1x128xf32>
    %cst_51 = arith.constant dense<0.000000e+00> : vector<1xf32>
    %210 = vector.multi_reduction <add>, %209, %cst_51 [1] : vector<1x128xf32> to vector<1xf32>
    %211 = vector.shape_cast %210 : vector<1xf32> to vector<1x1xf32>
    %212 = arith.mulf %81, %144 : vector<1x128xf32>
    %cst_52 = arith.constant dense<0.000000e+00> : vector<1xf32>
    %213 = vector.multi_reduction <add>, %212, %cst_52 [1] : vector<1x128xf32> to vector<1xf32>
    %214 = vector.shape_cast %213 : vector<1xf32> to vector<1x1xf32>
    %215 = arith.mulf %81, %172 : vector<1x128xf32>
    %cst_53 = arith.constant dense<0.000000e+00> : vector<1xf32>
    %216 = vector.multi_reduction <add>, %215, %cst_53 [1] : vector<1x128xf32> to vector<1xf32>
    %217 = vector.shape_cast %216 : vector<1xf32> to vector<1x1xf32>
    %cst_54 = arith.constant dense<0.000000e+00> : vector<1xf32>
    %218 = vector.multi_reduction <add>, %81, %cst_54 [1] : vector<1x128xf32> to vector<1xf32>
    %219 = vector.shape_cast %218 : vector<1xf32> to vector<1x1xf32>
    %220 = tpu.concatenate %178, %181, %184, %187, %190, %193, %196, %199, %202, %204, %206, %208, %211, %214, %217, %219 in 1 : vector<1x1xf32>, vector<1x1xf32>, vector<1x1xf32>, vector<1x1xf32>, vector<1x1xf32>, vector<1x1xf32>, vector<1x1xf32>, vector<1x1xf32>, vector<1x1xf32>, vector<1x1xf32>, vector<1x1xf32>, vector<1x1xf32>, vector<1x1xf32>, vector<1x1xf32>, vector<1x1xf32>, vector<1x1xf32> -> vector<1x16xf32>
    %cst_55 = arith.constant 0.000000e+00 : f32
    %221 = vector.broadcast %cst_55 : f32 to vector<1x112xf32>
    %222 = tpu.concatenate %220, %221 in 1 : vector<1x16xf32>, vector<1x112xf32> -> vector<1x128xf32>
    %cst_56 = arith.constant 0.000000e+00 : f32
    %223 = vector.broadcast %cst_56 : f32 to vector<5x128xf32>
    %224 = tpu.concatenate %108, %136, %164, %116, %144, %172, %62, %67, %55, %81, %222, %223 in 0 : vector<1x128xf32>, vector<1x128xf32>, vector<1x128xf32>, vector<1x128xf32>, vector<1x128xf32>, vector<1x128xf32>, vector<1x128xf32>, vector<1x128xf32>, vector<1x128xf32>, vector<1x128xf32>, vector<1x128xf32>, vector<5x128xf32> -> vector<16x128xf32>
    %225 = arith.index_cast %c0_i32 : i32 to index
    %c0_57 = arith.constant 0 : index
    %c0_58 = arith.constant 0 : index
    %226 = vector.load %arg6[%225, %c0_57, %c0_58] : memref<1x16x128xf32, #tpu.memory_space<vmem>>, vector<1x16x128xf32>
    %227 = vector.shape_cast %226 : vector<1x16x128xf32> to vector<16x128xf32>
    %228 = vector.shape_cast %224 : vector<16x128xf32> to vector<1x16x128xf32>
    tpu.vector_store %arg6[%225, %c0_57, %c0_58], %228 {strides = array<i32>} : memref<1x16x128xf32, #tpu.memory_space<vmem>>, vector<1x16x128xf32>,
    %c1_i32_59 = arith.constant 1 : i32
    return
  }
  func.func @transform_0(%arg0: i32, %arg1: memref<18xf32, #tpu.memory_space<smem>>) -> (i32, i32, i32) {
    %c0_i32 = arith.constant 0 : i32
    %c0_i32_0 = arith.constant 0 : i32
    %c0_i32_1 = arith.constant 0 : i32
    return %arg0, %c0_i32, %c0_i32_0 : i32, i32, i32
  }
  func.func @transform_1(%arg0: i32, %arg1: memref<18xf32, #tpu.memory_space<smem>>) -> (i32, i32, i32) {
    %c0_i32 = arith.constant 0 : i32
    %c0_i32_0 = arith.constant 0 : i32
    %c0_i32_1 = arith.constant 0 : i32
    return %arg0, %c0_i32, %c0_i32_0 : i32, i32, i32
  }
  func.func @transform_2(%arg0: i32, %arg1: memref<18xf32, #tpu.memory_space<smem>>) -> (i32, i32, i32) {
    %c0_i32 = arith.constant 0 : i32
    %c0_i32_0 = arith.constant 0 : i32
    %c0_i32_1 = arith.constant 0 : i32
    return %arg0, %c0_i32, %c0_i32_0 : i32, i32, i32
  }
  func.func @transform_3(%arg0: i32, %arg1: memref<18xf32, #tpu.memory_space<smem>>) -> (i32, i32, i32) {
    %c0_i32 = arith.constant 0 : i32
    %c0_i32_0 = arith.constant 0 : i32
    %c0_i32_1 = arith.constant 0 : i32
    return %arg0, %c0_i32, %c0_i32_0 : i32, i32, i32
  }
  func.func @transform_4(%arg0: i32, %arg1: memref<18xf32, #tpu.memory_space<smem>>) -> (i32, i32, i32) {
    %c0_i32 = arith.constant 0 : i32
    %c0_i32_0 = arith.constant 0 : i32
    %c0_i32_1 = arith.constant 0 : i32
    return %arg0, %c0_i32, %c0_i32_0 : i32, i32, i32
  }
}

</mosaic_0001>

<bundles_post_ra>
// kernel: tpu_custom_call.1
= control target key start
LH: loop header
LB: loop body
LE: loop exit
PB: predicated region body
PF: predicated region fallthrough
CT: control target
= control target key end

     0   :  { %s2079_s18 = smov [#allocation3]   ;;  %s3142_s0 = inlined_call_operand.hbm [shape: f32[18], index: 0, kind: input, shape index: {}]   ;;  %s3143_s1 = inlined_call_operand.hbm [shape: bf16[2,128,128], index: 1, kind: input, shape index: {}]   ;;  %s3144_s2 = inlined_call_operand.hbm [shape: bf16[2,128,128], index: 2, kind: input, shape index: {}]   ;;  %s3145_s3 = inlined_call_operand.hbm [shape: f32[2,8,128], index: 3, kind: input, shape index: {}]   ;;  %s3146_s4 = inlined_call_operand.hbm [shape: f32[2,8,128], index: 4, kind: input, shape index: {}]   ;;  %s3147_s5 = inlined_call_operand.hbm [shape: f32[2,16,128], index: 5, kind: output, shape index: {}]  }
   0x1   :  { %3175 = sst [smem:[#allocation42_spill]] %s3143_s1 }
   0x2   :  { %3176 = sst [smem:[#allocation43_spill]] %s3144_s2 }
   0x3   :  { %11 = dma.hbm_to_smem %s3142_s0, 16, %s2079_s18, [#allocation2] }
   0x4   :  { %2045 = dma.done.wait [#allocation2], 16 }
   0x5   :  { %2046 = vsyncadd [#allocation2], 4294967280 }
   0x6   :  { %13 = sfence }
   0x7   :  { %14 = vsyncpa [#allocation5], 0 }
   0x8   :  { %16 = vsyncpa [#allocation5 + $0x1], 0 }
   0x9   :  { %17 = vsyncpa [#allocation8], 0 }
   0xa   :  { %19 = vsyncpa [#allocation8 + $0x1], 0 }
   0xb   :  { %20 = vsyncpa [#allocation11], 0 }
   0xc   :  { %22 = vsyncpa [#allocation11 + $0x1], 0 }
   0xd   :  { %23 = vsyncpa [#allocation6], 0 }
   0xe   :  { %25 = vsyncpa [#allocation6 + $0x1], 0  ;;  %s2127_s21 = smov 0   ;;  %s2129_s22 = smov 0  }
   0xf   :  { %s2131_s23 = smov 0   ;;  %s2133_s24 = smov 0  }
  0x10 LB: > { %3177 = sst [smem:[#allocation18_spill]] %s2073_s23  ;;  %s2148_s0 = sadd.s32 4294967295, %s2077_s24   ;;  %s2077_s24 = sphi %s2133_s24, %s3238_s24   ;;  %s2073_s23 = sphi %s2131_s23, %s3240_s23   ;;  %s2069_s22 = sphi %s2129_s22, %s3242_s22   ;;  %s2065_s21 = sphi %s2127_s21, %s3241_s21  }
  0x11   : > { %s1625_s25 = sadd.s32 4294967294, %s2077_s24   ;;  %s2152_s26 = sadd.s32 1, %s2077_s24  }
  0x12   : > { %3178 = sst [smem:[#allocation19_spill]] %s2152_s26  ;;  %s38_s27 = sadd.s32 1, %s2073_s23 }
  0x13   : > { %s35_s28 = ssub.s32 %s2077_s24, %s2152_s26  ;;  %p45_p0 = scmp.ne.s32.totalorder %s2073_s23, %s2069_s22 }
  0x14   : > { %p36_p1 = scmp.eq.s32.totalorder %s35_s28, 0  ;;  %p46_p2 = scmp.eq.s32.totalorder %s2077_s24, 0 }
  0x15   : > { %p51_p3 = scmp.ne.s32.totalorder %s2069_s22, %s2065_s21  ;;  %p52_p4 = scmp.eq.s32.totalorder %s2148_s0, 0 }
  0x16   : > { %s2164_s29 = scalar_select %p36_p1, %s2073_s23, %s38_s27  }
  0x17   : > { %p47_p5 = por %p46_p2, %p45_p0  ;;  %p2166_p6 = por %p52_p4, %p51_p3 }
  0x18   : > { %3179 = sst [smem:[#allocation20_spill]] %s2164_s29  ;;  %p153_p7 = scmp.eq.s32.totalorder %s2148_s0, 1 }
  0x19   : > { %s3180_s30 = scalar_select %p2166_p6, 1, 0 }
  0x1a   : > { %p159_p8 = scmp.eq.s32.totalorder %s1625_s25, 1  ;;  %p1776_p10 = scmp.lt.s32.totalorder %s2077_s24, 2 }
  0x1b   : > { %p2173_p11 = por %p153_p7, %p45_p0  ;;  %s2182_s8 = sand.u32 1, %s2073_s23  }
  0x1c   : > { %p2177_p12 = por %p159_p8, %p51_p3  ;;  %s1682_s9 = sshll.u32 %s2077_s24, 10 }
  0x1d   : > { %s3181_s6 = scalar_select %p2173_p11, 1, 0 }
  0x1e   : > { %s3182_s7 = scalar_select %p2177_p12, 1, 0 }
  0x1f   : > { %s1628_s10 = sshll.u32 %s2182_s8, 6  ;;  %p2186_p13 = pnand %p1776_p10, %p47_p5 }
  0x20   : > { %s200_s12 = sand.u32 1, %s2077_s24   ;;  %s3184_s2 = sld [smem:[#allocation43_spill]] }
  0x21   : > { %s204_s16 = scalar_lea.vmem [#allocation7], %s1628_s10  ;;  %s2203_s18 = scalar_lea.sflag [#allocation8], %s200_s12 }
  0x22   : > { %s211_s17 = sshll.u32 %s204_s16, 4  ;;  %p2209_p2 = pneg %p2186_p13  ;;  %s2200_s17 = int_to_ptr.vmem [resolvable:$true] %s211_s17 }
  0x26   : > { %s2196_s15 = scalar_lea.hbm %s3184_s2, %s1682_s9  ;;  %s1896_s28 = scalar_lea.hbm %s3184_s2, 2048 }
  0x27   : > { %s1891_s19 = scalar_lea.hbm %s2196_s15, 1024  ;;  %p1897_p5 = scmp.lt.s32.totalorder %s2196_s15, %s3184_s2 }
  0x28   : > { %p1892_p1 = scmp.ne.s32.totalorder %s2196_s15, %s1891_s19  ;;  %p1898_p7 = scmp.lt.s32.totalorder %s1896_s28, %s1891_s19 }
  0x2a   : > { %p1894_p3 = pnand %p2209_p2, %p1892_p1  ;;  %p1899_p8 = por %p1898_p7, %p1897_p5 }
  0x2c   : > { %p1895_p4 = pneg %p1894_p3 }
  0x2e   : > { %p1900_p10 = pnand %p1899_p8, %p1895_p4 }
  0x30   : > { %1903 = shalt.err (!%p1900_p10)
}
  0x31   : > { %s1904_s12 = scalar_lea.vmem %s2200_s17, 1024  ;;  %s2080_s16 = smov [#allocation7]  }
  0x32   : > { %p1905_p9 = scmp.ne.s32.totalorder %s2200_s17, %s1904_s12  ;;  %s1909_s25 = sshll.u32 %s2080_s16, 4  ;;  %s1910_s25 = int_to_ptr.vmem [resolvable:$false] %s1909_s25 }
  0x33   : > { %s1911_s27 = scalar_lea.vmem %s1910_s25, 2048  ;;  %p1912_p0 = scmp.lt.s32.totalorder %s2200_s17, %s1910_s25 }
  0x34   : > { %p1907_p1 = pnand %p1905_p9, %p2209_p2  ;;  %p1913_p12 = scmp.lt.s32.totalorder %s1911_s27, %s1904_s12 }
  0x36   : > { %p1908_p3 = pneg %p1907_p1  ;;  %p1914_p11 = por %p1913_p12, %p1912_p0 }
  0x38   : > { %p1915_p6 = pnand %p1914_p11, %p1908_p3 }
  0x3a   : > { %1918 = shalt.err (!%p1915_p6)
}
  0x3b   : > { %s3150_s19 = smov 64   ;;  %s3151_s28 = smov 4  }
  0x3c   : > { %1765 = dma.hbm_to_vmem [thread:$0]  (!%p2186_p13), %s2196_s15, 1024, %s2200_s17, %s2203_s18, %s3150_s19, %s3150_s19, %s3151_s28  }
  0x3d   : > { %p255_p9 = scmp.lt.s32.totalorder %s2077_s24, 3  ;;  %s3186_s1 = sld [smem:[#allocation42_spill]] }
  0x3e   : > { %p3187_p6 = scmp.ge.s32.totalorder %s2077_s24, 1  ;;  %s183_s25 = scalar_lea.vmem [#allocation4], %s1628_s10 }
  0x3f   : > { %s190_s27 = sshll.u32 %s183_s25, 4  ;;  %s1634_s15 = sshll.u32 %s2182_s8, 3  ;;  %s2251_s27 = int_to_ptr.vmem [resolvable:$true] %s190_s27 }
  0x40   : > { %p2245_p11 = pnand %p3187_p6, %p255_p9  ;;  %s180_s17 = scalar_lea.sflag [#allocation5], %s2182_s8 }
  0x42   : > { %s3188_s16 = scalar_select %p2245_p11, 1, 0 }
  0x43   : > { %s2241_s12 = scalar_lea.hbm %s3186_s1, %s1682_s9  ;;  %s1924_s14 = scalar_lea.hbm %s3186_s1, 2048 }
  0x44   : > { %s1919_s19 = scalar_lea.hbm %s2241_s12, 1024  ;;  %p1925_p5 = scmp.lt.s32.totalorder %s2241_s12, %s3186_s1 }
  0x45   : > { %p1920_p12 = scmp.ne.s32.totalorder %s2241_s12, %s1919_s19  ;;  %p1926_p7 = scmp.lt.s32.totalorder %s1924_s14, %s1919_s19 }
  0x47   : > { %p1922_p0 = pnand %p1920_p12, %p2209_p2  ;;  %p1927_p8 = por %p1926_p7, %p1925_p5 }
  0x49   : > { %p1923_p4 = pneg %p1922_p0 }
  0x4b   : > { %p1928_p10 = pnand %p1927_p8, %p1923_p4 }
  0x4d   : > { %1931 = shalt.err (!%p1928_p10)
}
  0x4e   : > { %s1932_s10 = scalar_lea.vmem %s2251_s27, 1024  ;;  %s2083_s25 = smov [#allocation4]  }
  0x4f   : > { %p1933_p1 = scmp.ne.s32.totalorder %s2251_s27, %s1932_s10  ;;  %s1937_s9 = sshll.u32 %s2083_s25, 4  ;;  %s1938_s9 = int_to_ptr.vmem [resolvable:$false] %s1937_s9 }
  0x50   : > { %s1939_s13 = scalar_lea.vmem %s1938_s9, 2048  ;;  %p1940_p6 = scmp.lt.s32.totalorder %s2251_s27, %s1938_s9 }
  0x51   : > { %p1935_p3 = pnand %p1933_p1, %p2209_p2  ;;  %p1941_p12 = scmp.lt.s32.totalorder %s1939_s13, %s1932_s10 }
  0x53   : > { %p1936_p9 = pneg %p1935_p3  ;;  %p1942_p0 = por %p1941_p12, %p1940_p6 }
  0x55   : > { %p1943_p11 = pnand %p1942_p0, %p1936_p9 }
  0x57   : > { %1946 = shalt.err (!%p1943_p11)
}
  0x58   : > { %s3189_s2 = smov 4   ;;  %s3190_s19 = smov 64  }
  0x59   : > { %1762 = dma.hbm_to_vmem [thread:$0]  (!%p2186_p13), %s2241_s12, 1024, %s2251_s27, %s180_s17, %s3190_s19, %s3190_s19, %s3189_s2  }
  0x5a   : > { %s1635_s28 = sshll.u32 %s2077_s24, 7  ;;  %s225_s9 = scalar_lea.vmem [#allocation9], %s1634_s15 }
  0x5b   : > { %s230_s10 = scalar_lea.hbm %s3145_s3, %s1635_s28  ;;  %s232_s13 = sshll.u32 %s225_s9, 4  ;;  %s233_s13 = int_to_ptr.vmem [resolvable:$true] %s232_s13 }
  0x5c   : > { %s1947_s1 = scalar_lea.hbm %s230_s10, 128  ;;  %s1952_s26 = scalar_lea.hbm %s3145_s3, 256 }
  0x5d   : > { %p1948_p11 = scmp.ne.s32.totalorder %s230_s10, %s1947_s1  ;;  %p1953_p7 = scmp.lt.s32.totalorder %s230_s10, %s3145_s3 }
  0x5e   : > { %p1954_p8 = scmp.lt.s32.totalorder %s1952_s26, %s1947_s1 }
  0x5f   : > { %p1950_p4 = pnand %p1948_p11, %p2209_p2 }
  0x60   : > { %p1955_p10 = por %p1954_p8, %p1953_p7 }
  0x61   : > { %p1951_p5 = pneg %p1950_p4 }
  0x63   : > { %p1956_p1 = pnand %p1955_p10, %p1951_p5 }
  0x65   : > { %1959 = shalt.err (!%p1956_p1)
}
  0x66   : > { %s1960_s17 = scalar_lea.vmem %s233_s13, 128  ;;  %s2084_s2 = smov [#allocation9]  }
  0x67   : > { %p1961_p3 = scmp.ne.s32.totalorder %s233_s13, %s1960_s17  ;;  %s1965_s19 = sshll.u32 %s2084_s2, 4  ;;  %s1966_s19 = int_to_ptr.vmem [resolvable:$false] %s1965_s19 }
  0x68   : > { %s1967_s14 = scalar_lea.vmem %s1966_s19, 256  ;;  %p1968_p12 = scmp.lt.s32.totalorder %s233_s13, %s1966_s19 }
  0x69   : > { %p1963_p9 = pnand %p1961_p3, %p2209_p2  ;;  %p1969_p0 = scmp.lt.s32.totalorder %s1967_s14, %s1960_s17 }
  0x6b   : > { %p1964_p6 = pneg %p1963_p9  ;;  %p1970_p11 = por %p1969_p0, %p1968_p12 }
  0x6d   : > { %p1971_p4 = pnand %p1970_p11, %p1964_p6 }
  0x6f   : > { %1974 = shalt.err (!%p1971_p4)
}
  0x70   : > { %1768 = dma.hbm_to_vmem [thread:$0]  (!%p2186_p13), %s230_s10, 128, %s233_s13, %s2203_s18  }
  0x71   : > { %s2304_s26 = scalar_lea.hbm %s3146_s4, %s1635_s28  ;;  %s243_s29 = scalar_lea.vmem [#allocation10], %s1634_s15 }
  0x72   : > { %s250_s25 = sshll.u32 %s243_s29, 4  ;;  %s240_s9 = scalar_lea.sflag [#allocation11], %s2182_s8  ;;  %s251_s25 = int_to_ptr.vmem [resolvable:$true] %s250_s25 }
  0x73   : > { %s1975_s12 = scalar_lea.hbm %s2304_s26, 128  ;;  %s1980_s13 = scalar_lea.hbm %s3146_s4, 256 }
  0x74   : > { %p1976_p5 = scmp.ne.s32.totalorder %s2304_s26, %s1975_s12  ;;  %p1981_p10 = scmp.lt.s32.totalorder %s2304_s26, %s3146_s4 }
  0x75   : > { %p1982_p1 = scmp.lt.s32.totalorder %s1980_s13, %s1975_s12 }
  0x76   : > { %p1978_p7 = pnand %p1976_p5, %p2209_p2 }
  0x77   : > { %p1983_p3 = por %p1982_p1, %p1981_p10 }
  0x78   : > { %p1979_p8 = pneg %p1978_p7 }
  0x7a   : > { %p1984_p9 = pnand %p1983_p3, %p1979_p8 }
  0x7c   : > { %1987 = shalt.err (!%p1984_p9)
}
  0x7d   : > { %s1988_s15 = scalar_lea.vmem %s251_s25, 128  ;;  %s2085_s8 = smov [#allocation10]  }
  0x7e   : > { %p1989_p6 = scmp.ne.s32.totalorder %s251_s25, %s1988_s15  ;;  %s1993_s17 = sshll.u32 %s2085_s8, 4  ;;  %s1994_s17 = int_to_ptr.vmem [resolvable:$false] %s1993_s17 }
  0x7f   : > { %s1995_s2 = scalar_lea.vmem %s1994_s17, 256  ;;  %p1996_p11 = scmp.lt.s32.totalorder %s251_s25, %s1994_s17 }
  0x80   : > { %p1991_p12 = pnand %p1989_p6, %p2209_p2  ;;  %p1997_p4 = scmp.lt.s32.totalorder %s1995_s2, %s1988_s15 }
  0x82   : > { %p1992_p0 = pneg %p1991_p12  ;;  %p1998_p5 = por %p1997_p4, %p1996_p11 }
  0x84   : > { %p1999_p7 = pnand %p1998_p5, %p1992_p0 }
  0x86   : > { %2002 = shalt.err (!%p1999_p7)
}
  0x87   : > { %1771 = dma.hbm_to_vmem [thread:$0]  (!%p2186_p13), %s2304_s26, 128, %s251_s25, %s240_s9  }
  0x88   : > { %p3191_p8 = scmp.ne.s32.totalorder %s3188_s16, 0 }
  0x8a   : > { %259 = sbr.rel (%p3191_p8) target bundleno = 861 (0x35d), region = 36 }
  0x8f   : > { %s2328_s20 = sand.u32 1, %s2069_s22   ;;  %p3192_p2 = scmp.ne.s32.totalorder %s3180_s30, 0 }
  0x90   : > { %s1639_s19 = sshll.u32 %s2328_s20, 6  ;;  %s262_s14 = scalar_lea.sflag [#allocation5], %s2328_s20 }
  0x91   : > { %s2332_s1 = scalar_lea.vmem [#allocation4], %s1639_s19 }
  0x92   : > { %2048 = dma.done.wait (%p3192_p2), %s262_s14, 1024  }
  0x93   : > { %2050 = vsyncadd (%p3192_p2), %s262_s14, 4294966272  ;;  %s270_s11 = sand.u32 1, %s2148_s0   ;;  %s2339_s23 = scalar_lea.vmem [#allocation7], %s1639_s19 }
  0x94   : > { %s271_s16 = scalar_lea.sflag [#allocation8], %s270_s11 }
  0x95   : > { %2052 = dma.done.wait (%p3192_p2), %s271_s16, 1152  }
  0x96   : > { %2054 = vsyncadd (%p3192_p2), %s271_s16, 4294966144  ;;  %s1641_s26 = sshll.u32 %s2328_s20, 3  ;;  %s289_s25 = scalar_lea.sflag [#allocation11], %s2328_s20 }
  0x97   : > { %s2346_s29 = scalar_lea.vmem [#allocation9], %s1641_s26  ;;  %s292_s9 = scalar_lea.vmem [#allocation10], %s1641_s26 }
  0x98   : > { %2056 = dma.done.wait (%p3192_p2), %s289_s25, 128  }
  0x99   : > { %2058 = vsyncadd (%p3192_p2), %s289_s25, 4294967168  ;;  %v2086_v0 = vmov 0   ;;  %v558_v1 = vld [vmem:[%s292_s9] sm:$0xff]  ;;  %v1867_v4 = vld [vmem:[%s2332_s1 + $0x28] sm:$0xff]   ;;  %v2087_v16 = vmov 3   ;;  %v2088_v22 = vmov 2  }
  0x9a   : > { %1821 = vset.pattern.permute.xlu1 %v2086_v0  ;;  %559 = vxpose.xlu0.b32.start.end [1/1] (short) %v558_v1, 128  ;;  %v1865_v2 = vld [vmem:[%s2332_s1 + $0x38] sm:$0xff]   ;;  %v1866_v3 = vld [vmem:[%s2332_s1 + $0x30] sm:$0xff]   ;;  %v1868_v5 = vld [vmem:[%s2332_s1 + $0x20] sm:$0xff]   ;;  %v2089_v24 = vmov 1   ;;  %s2928_s30 = smul.u32 9, %s2148_s0  ;;  %p3235_p10 = scmp.ne.s32.totalorder %s3181_s6, 0 }
  0x9b   : > { %1701 = vmatprep.subr.bf16.mxu0 %v1865_v2  ;;  %1733 = vmatprep.subr.bf16.mxu1 %v1865_v2  ;;  %v1873_v6 = vld [vmem:[%s2339_s23] sm:$0xff]   ;;  %v1869_v7 = vld [vmem:[%s2332_s1 + $0x18] sm:$0xff]   ;;  %v1870_v8 = vld [vmem:[%s2332_s1 + $0x10] sm:$0xff]  }
  0x9c   : > { %1702 = vmatpush3.bf16.msra.mxu0 %v1865_v2  ;;  %1741 = vmatpush3.bf16.msra.mxu1 %v1865_v2  ;;  %v1871_v9 = vld [vmem:[%s2332_s1 + $0x8] sm:$0xff]   ;;  %v1872_v10 = vld [vmem:[%s2332_s1] sm:$0xff]   ;;  %v1875_v13 = vld [vmem:[%s2339_s23 + $0x10] sm:$0xff]   ;;  %s1287_s12 = sadd.s32 4, %s2928_s30  ;;  %s1262_s18 = sadd.s32 1, %s2928_s30 }
  0x9d   : > { %1703 = vmatprep.subr.bf16.mxu0 %v1866_v3  ;;  %1734 = vmatprep.subr.bf16.mxu1 %v1866_v3  ;;  %v1874_v11 = vld [vmem:[%s2339_s23 + $0x8] sm:$0xff]   ;;  %v1877_v12 = vld [vmem:[%s2339_s23 + $0x20] sm:$0xff]   ;;  %v1876_v15 = vld [vmem:[%s2339_s23 + $0x18] sm:$0xff]   ;;  %s2961_s10 = sld [smem:[#allocation3 + %s1287_s12]]  ;;  %s1312_s13 = sadd.s32 7, %s2928_s30 }
  0x9e   : > { %1717 = vmatprep.mubr.bf16.mxu0 %v1873_v6  ;;  %v1878_v14 = vld [vmem:[%s2339_s23 + $0x28] sm:$0xff]   ;;  %1725 = vmatprep.mubr.bf16.mxu1 %v1877_v12  ;;  %v1879_v17 = vld [vmem:[%s2339_s23 + $0x30] sm:$0xff]   ;;  %v1880_v18 = vld [vmem:[%s2339_s23 + $0x38] sm:$0xff]   ;;  %s2967_s27 = sld [smem:[#allocation3 + %s2928_s30]]  ;;  %s1285_s28 = sadd.s32 3, %s2928_s30 }
  0x9f   : > { %s2978_s15 = sld [smem:[#allocation3 + %s1262_s18]]  ;;  %s1289_s8 = sadd.s32 5, %s2928_s30 }
  0xa0   : > { %1704 = vmatpush3.bf16.msra.mxu0 %v1866_v3  ;;  %1742 = vmatpush3.bf16.msra.mxu1 %v1866_v3  ;;  %s2987_s17 = sld [smem:[#allocation3 + %s1312_s13]]  ;;  %s1264_s14 = sadd.s32 2, %s2928_s30 }
  0xa1   : > { %1705 = vmatprep.subr.bf16.mxu0 %v1867_v4  ;;  %1735 = vmatprep.subr.bf16.mxu1 %v1867_v4  ;;  %s2990_s2 = sld [smem:[#allocation3 + %s1285_s28]]  ;;  %s1310_s1 = sadd.s32 6, %s2928_s30 }
  0xa2   : > { %s2996_s19 = sld [smem:[#allocation3 + %s1289_s8]]  ;;  %s1314_s11 = sadd.s32 8, %s2928_s30 }
  0xa3   : > { %s3005_s16 = sld [smem:[#allocation3 + %s1264_s14]]  ;;  %s1684_s30 = sshll.u32 %s2148_s0, 8 }
  0xa4   : > { %1706 = vmatpush3.bf16.msra.mxu0 %v1867_v4  ;;  %1743 = vmatpush3.bf16.msra.mxu1 %v1867_v4  ;;  %s3007_s23 = sld [smem:[#allocation3 + %s1310_s1]]  ;;  %s1473_s13 = scalar_lea.sflag [#allocation6], %s2328_s20 }
  0xa5   : > { %1707 = vmatprep.subr.bf16.mxu0 %v1868_v5  ;;  %1736 = vmatprep.subr.bf16.mxu1 %v1868_v5  ;;  %s3011_s26 = sld [smem:[#allocation3 + %s1314_s11]] }
  0xa8   : > { %1708 = vmatpush3.bf16.msra.mxu0 %v1868_v5  ;;  %1744 = vmatpush3.bf16.msra.mxu1 %v1868_v5 }
  0xa9   : > { %1709 = vmatprep.subr.bf16.mxu0 %v1869_v7  ;;  %1737 = vmatprep.subr.bf16.mxu1 %v1869_v7 }
  0xac   : > { %1710 = vmatpush3.bf16.msra.mxu0 %v1869_v7  ;;  %1745 = vmatpush3.bf16.msra.mxu1 %v1869_v7 }
  0xad   : > { %1711 = vmatprep.subr.bf16.mxu0 %v1870_v8  ;;  %1738 = vmatprep.subr.bf16.mxu1 %v1870_v8 }
  0xb0   : > { %1712 = vmatpush3.bf16.msra.mxu0 %v1870_v8  ;;  %1746 = vmatpush3.bf16.msra.mxu1 %v1870_v8 }
  0xb1   : > { %1713 = vmatprep.subr.bf16.mxu0 %v1871_v9  ;;  %1739 = vmatprep.subr.bf16.mxu1 %v1871_v9 }
  0xb4   : > { %1714 = vmatpush3.bf16.msra.mxu0 %v1871_v9  ;;  %1747 = vmatpush3.bf16.msra.mxu1 %v1871_v9 }
  0xb5   : > { %1715 = vmatprep.subr.bf16.mxu0 %v1872_v10  ;;  %1740 = vmatprep.subr.bf16.mxu1 %v1872_v10 }
  0xb8   : > { %1716 = vmatpush3.bf16.msra.mxu0 %v1872_v10  ;;  %1748 = vmatpush3.bf16.msra.mxu1 %v1872_v10 }
  0xbb   : > { %1718 = vmatmul.mubr.bf16.vlgmr.msra.gmra.mxu0 %v1874_v11  ;;  %1726 = vmatmul.mubr.bf16.vlgmr.msra.gmra.mxu1 %v1878_v14 }
  0xbc   : > { %1721 = vmatprep.mubr.bf16.mxu0 %v1875_v13  ;;  %1729 = vmatprep.mubr.bf16.mxu1 %v1879_v17 }
  0xc3   : > { %1820 = vset.pattern.permute.xlu0 %v2087_v16  ;;  %1722 = vmatmul.mubr.bf16.gmra.mxu0 %v1876_v15 }
  0xc4   : > { %1730 = vmatmul.mubr.bf16.gmra.mxu1 %v1880_v18 }
 0x116   : > { %v575_v19 = vpop.trf.xlu0 }
 0x117   : > { %925 = vperm.xlu1 %1821, %v575_v19   ;;  %vm591_vm0 = vcmp.gt.f32.partialorder %v575_v19, 0.0 }
 0x118   : > { %v623_v20 = vsel %vm591_vm0, 1, %v2086_v0 }
 0x119   : > { %640 = vperm.xlu0 %1820, %v623_v20  }
 0x11a   : > { %v576_v21 = vpop.trf.xlu0 }
 0x11b   : > { %1822 = vset.pattern.permute.xlu1 %v2088_v22  ;;  %vm592_vm1 = vcmp.gt.f32.partialorder %v576_v21, 0.0 }
 0x11c   : > { %1142 = vperm.xlu1 %1822, %v575_v19   ;;  %v624_v30 = vsel %vm592_vm1, 1, %v2086_v0 }
 0x11d   : > { %1850 = vset.pattern.permute.xlu0 %v2086_v0 }
 0x11e   : > { %v577_v23 = vpop.trf.xlu0 }
 0x11f   : > { %vm593_vm2 = vcmp.gt.f32.partialorder %v577_v23, 0.0 }
 0x120   : > { %1823 = vset.pattern.permute.xlu1 %v2089_v24  ;;  %v625_v35 = vsel %vm593_vm2, 1, %v2086_v0 }
 0x121   : > { %1041 = vperm.xlu1 %1823, %v575_v19  }
 0x122   : > { %v578_v25 = vpop.trf.xlu0 }
 0x123   : > { %vm594_vm3 = vcmp.gt.f32.partialorder %v578_v25, 0.0 }
 0x124   : > { %v626_v38 = vsel %vm594_vm3, 1, %v2086_v0 }
 0x125   : > { %1824 = vset.pattern.permute.xlu1 %v2086_v0 }
 0x126   : > { %930 = vperm.xlu1 %1824, %v576_v21   ;;  %v579_v26 = vpop.trf.xlu0 }
 0x127   : > { %vm595_vm4 = vcmp.gt.f32.partialorder %v579_v26, 0.0 }
 0x128   : > { %v627_v39 = vsel %vm595_vm4, 1, %v2086_v0 }
 0x12a   : > { %1825 = vset.pattern.permute.xlu1 %v2088_v22  ;;  %v2377_v27 = vpop.trf.xlu0 }
 0x12b   : > { %1146 = vperm.xlu1 %1825, %v576_v21   ;;  %vm596_vm5 = vcmp.gt.f32.partialorder %v2377_v27, 0.0 }
 0x12c   : > { %v628_v41 = vsel %vm596_vm5, 1, %v2086_v0 }
 0x12e   : > { %v2379_v28 = vpop.trf.xlu0 }
 0x12f   : > { %1826 = vset.pattern.permute.xlu1 %v2089_v24  ;;  %vm597_vm6 = vcmp.gt.f32.partialorder %v2379_v28, 0.0 }
 0x130   : > { %1045 = vperm.xlu1 %1826, %v576_v21   ;;  %v629_v43 = vsel %vm597_vm6, 1, %v2086_v0 }
 0x132   : > { %v2382_v29 = vpop.trf.xlu0 }
 0x133   : > { %vm598_vm7 = vcmp.gt.f32.partialorder %v2382_v29, 0.0 }
 0x134   : > { %1827 = vset.pattern.permute.xlu1 %v2087_v16  ;;  %v630_v44 = vsel %vm598_vm7, 1, %v2086_v0 }
 0x135   : > { %643 = vperm.xlu1 %1827, %v624_v30  }
 0x136   : > { %v2386_v31 = vpop.trf.xlu0 }
 0x137   : > { %vm599_vm8 = vcmp.gt.f32.partialorder %v2386_v31, 0.0 }
 0x138   : > { %v631_v45 = vsel %vm599_vm8, 1, %v2086_v0 }
 0x139   : > { %1828 = vset.pattern.permute.xlu1 %v2086_v0 }
 0x13a   : > { %935 = vperm.xlu1 %1828, %v577_v23   ;;  %v2389_v32 = vpop.trf.xlu0 }
 0x13b   : > { %vm600_vm9 = vcmp.gt.f32.partialorder %v2389_v32, 0.0 }
 0x13c   : > { %v632_v46 = vsel %vm600_vm9, 1, %v2086_v0 }
 0x13e   : > { %1829 = vset.pattern.permute.xlu1 %v2088_v22  ;;  %v2392_v33 = vpop.trf.xlu0 }
 0x13f   : > { %1150 = vperm.xlu1 %1829, %v577_v23   ;;  %975 = vperm.xlu0 %1850, %v2392_v33   ;;  %vm601_vm10 = vcmp.gt.f32.partialorder %v2392_v33, 0.0 }
 0x140   : > { %v633_v47 = vsel %vm601_vm10, 1, %v2086_v0 }
 0x142   : > { %v2395_v34 = vpop.trf.xlu0 }
 0x143   : > { %1830 = vset.pattern.permute.xlu1 %v2087_v16  ;;  %980 = vperm.xlu0 %1850, %v2395_v34   ;;  %vm602_vm11 = vcmp.gt.f32.partialorder %v2395_v34, 0.0 }
 0x144   : > { %646 = vperm.xlu1 %1830, %v625_v35   ;;  %v634_v48 = vsel %vm602_vm11, 1, %v2086_v0 }
 0x146   : > { %v2404_v36 = vpop.trf.xlu0 }
 0x147   : > { %1853 = vset.pattern.permute.xlu0 %v2088_v22  ;;  %vm603_vm12 = vcmp.gt.f32.partialorder %v2404_v36, 0.0 }
 0x148   : > { %1831 = vset.pattern.permute.xlu1 %v2086_v0  ;;  %1158 = vperm.xlu0 %1853, %v579_v26   ;;  %v635_v49 = vsel %vm603_vm12, 1, %v2086_v0 }
 0x149   : > { %940 = vperm.xlu1 %1831, %v578_v25  }
 0x14a   : > { %v2409_v37 = vpop.trf.xlu0 }
 0x14b   : > { %vm604_vm13 = vcmp.gt.f32.partialorder %v2409_v37, 0.0 }
 0x14c   : > { %1170 = vperm.xlu0 %1853, %v2382_v29   ;;  %v636_v51 = vsel %vm604_vm13, 1, %v2086_v0 }
 0x14d   : > { %1832 = vset.pattern.permute.xlu1 %v2088_v22 }
 0x14e   : > { %1154 = vperm.xlu1 %1832, %v578_v25   ;;  %v2426_v40 = vpop.trf.xlu0 }
 0x14f   : > { %vm605_vm14 = vcmp.gt.f32.partialorder %v2426_v40, 0.0 }
 0x150   : > { %1174 = vperm.xlu0 %1853, %v2386_v31   ;;  %v637_v53 = vsel %vm605_vm14, 1, %v2086_v0 }
 0x152   : > { %1833 = vset.pattern.permute.xlu1 %v2089_v24  ;;  %v2432_v42 = vpop.trf.xlu0 }
 0x153   : > { %1053 = vperm.xlu1 %1833, %v578_v25   ;;  %vm606_vm15 = vcmp.gt.f32.partialorder %v2432_v42, 0.0 }
 0x154   : > { %1190 = vperm.xlu0 %1853, %v2404_v36   ;;  %v638_v55 = vsel %vm606_vm15, 1, %v2086_v0 }
 0x157   : > { %1834 = vset.pattern.permute.xlu1 %v2087_v16 }
 0x158   : > { %649 = vperm.xlu1 %1834, %v626_v38   ;;  %1194 = vperm.xlu0 %1853, %v2409_v37  }
 0x15c   : > { %1835 = vset.pattern.permute.xlu1 %v2086_v0  ;;  %1857 = vset.pattern.permute.xlu0 %v2089_v24 }
 0x15d   : > { %945 = vperm.xlu1 %1835, %v579_v26   ;;  %1049 = vperm.xlu0 %1857, %v577_v23  }
 0x161   : > { %1836 = vset.pattern.permute.xlu1 %v2089_v24  ;;  %1061 = vperm.xlu0 %1857, %v2377_v27  }
 0x162   : > { %1057 = vperm.xlu1 %1836, %v579_v26  }
 0x165   : > { %1073 = vperm.xlu0 %1857, %v2386_v31  }
 0x166   : > { %1837 = vset.pattern.permute.xlu1 %v2087_v16 }
 0x167   : > { %652 = vperm.xlu1 %1837, %v627_v39  }
 0x169   : > { %1077 = vperm.xlu0 %1857, %v2389_v32  }
 0x16b   : > { %1838 = vset.pattern.permute.xlu1 %v2086_v0 }
 0x16c   : > { %950 = vperm.xlu1 %1838, %v2377_v27  }
 0x16d   : > { %1093 = vperm.xlu0 %1857, %v2409_v37  }
 0x170   : > { %1839 = vset.pattern.permute.xlu1 %v2087_v16 }
 0x171   : > { %655 = vperm.xlu1 %1839, %v628_v41   ;;  %1097 = vperm.xlu0 %1857, %v2426_v40  }
 0x175   : > { %1840 = vset.pattern.permute.xlu1 %v2086_v0  ;;  %1862 = vset.pattern.permute.xlu0 %v2086_v0 }
 0x176   : > { %955 = vperm.xlu1 %1840, %v2379_v28   ;;  %1000 = vperm.xlu0 %1862, %v2432_v42  }
 0x17a   : > { %1841 = vset.pattern.permute.xlu1 %v2087_v16  ;;  %1864 = vset.pattern.permute.xlu0 %v2088_v22 }
 0x17b   : > { %658 = vperm.xlu1 %1841, %v629_v43   ;;  %v1719_v11 = vpop.f32.mrf.mxu0  ;;  %v2535_v12 = vpop.f32.mrf.mxu1 }
 0x17c   : > { %v609_v30 = vsub.f32 1.0, %v1719_v11 }
 0x17d   : > { %v495_v14 = vpop.f32.mrf.mxu0  ;;  %v2538_v15 = vpop.f32.mrf.mxu1 }
 0x17f   : > { %661 = vperm.xlu1 %1841, %v630_v44   ;;  %v1720_v16 = vpop.f32.mrf.mxu0  ;;  %v2542_v17 = vpop.f32.mrf.mxu1 }
 0x181   : > { %v498_v18 = vpop.f32.mrf.mxu0  ;;  %v530_v21 = vpop.f32.mrf.mxu1 }
 0x182   : > { %v608_v35 = vsub.f32 1.0, %v498_v18 }
 0x183   : > { %664 = vperm.xlu1 %1841, %v631_v45   ;;  %v1723_v20 = vpop.f32.mrf.mxu0 }
 0x184   : > { %v613_v39 = vsub.f32 1.0, %v1723_v20 }
 0x185   : > { %v511_v25 = vpop.f32.mrf.mxu0 }
 0x186   : > { %v611_v41 = vsub.f32 1.0, %v511_v25 }
 0x187   : > { %667 = vperm.xlu1 %1841, %v632_v46   ;;  %v1724_v26 = vpop.f32.mrf.mxu0 }
 0x18b   : > { %670 = vperm.xlu1 %1841, %v633_v47  }
 0x18f   : > { %673 = vperm.xlu1 %1841, %v634_v48  }
 0x192   : > { %v2454_v50 = vpop.permute.xlu1 %925 }
 0x193   : > { %676 = vperm.xlu1 %1841, %v635_v49  }
 0x197   : > { %v2458_v52 = vpop.permute.xlu1 %1142  ;;  %679 = vperm.xlu1 %1841, %v636_v51  }
 0x19b   : > { %682 = vperm.xlu1 %1841, %v637_v53  }
 0x19c   : > { %v2462_v54 = vpop.permute.xlu1 %1041 }
 0x19f   : > { %685 = vperm.xlu1 %1841, %v638_v55  }
 0x1a1   : > { %v2465_v56 = vpop.permute.xlu1 %930 }
 0x1a3   : > { %1842 = vset.pattern.permute.xlu1 %v2088_v22 }
 0x1a4   : > { %1162 = vperm.xlu1 %1842, %v2377_v27  }
 0x1a6   : > { %v2469_v57 = vpop.permute.xlu1 %1146 }
 0x1a8   : > { %1166 = vperm.xlu1 %1842, %v2379_v28  }
 0x1ab   : > { %v2472_v58 = vpop.permute.xlu1 %1045 }
 0x1ac   : > { %1843 = vset.pattern.permute.xlu1 %v2089_v24 }
 0x1ad   : > { %1065 = vperm.xlu1 %1843, %v2379_v28  }
 0x1b0   : > { %v2476_v59 = vpop.permute.xlu1 %643 }
 0x1b1   : > { %1844 = vset.pattern.permute.xlu1 %v2086_v0  ;;  %vm688_vm1 = vcmp.eq.s32.totalorder %v2476_v59, 1 }
 0x1b2   : > { %960 = vperm.xlu1 %1844, %v2382_v29   ;;  %v2556_v48 = vsel %vm688_vm1, %v608_v35, 1e+09  ;;  %v719_v35 = vlaneseq }
 0x1b5   : > { %v2480_v60 = vpop.permute.xlu1 %935 }
 0x1b6   : > { %1845 = vset.pattern.permute.xlu1 %v2089_v24 }
 0x1b7   : > { %1069 = vperm.xlu1 %1845, %v2382_v29   ;;  %v641_v29 = vpop.permute.xlu0 %640 }
 0x1b8   : > { %vm687_vm0 = vcmp.eq.s32.totalorder %v641_v29, 1 }
 0x1ba   : > { %v2484_v61 = vpop.permute.xlu1 %1150 }
 0x1bb   : > { %1846 = vset.pattern.permute.xlu1 %v2086_v0 }
 0x1bc   : > { %965 = vperm.xlu1 %1846, %v2386_v31   ;;  %v514_v31 = vpop.f32.mrf.mxu0 }
 0x1bd   : > { %v612_v43 = vsub.f32 1.0, %v514_v31 }
 0x1bf   : > { %v2488_v62 = vpop.permute.xlu1 %646 }
 0x1c0   : > { %1847 = vset.pattern.permute.xlu1 %v2088_v22  ;;  %vm689_vm2 = vcmp.eq.s32.totalorder %v2488_v62, 1 }
 0x1c1   : > { %1178 = vperm.xlu1 %1847, %v2389_v32   ;;  %v2559_v53 = vsel %vm689_vm2, %v609_v30, 1e+09 }
 0x1c4   : > { %v2492_v63 = vpop.permute.xlu1 %940 }
 0x1c5   : > { %1848 = vset.pattern.permute.xlu1 %v2086_v0 }
 0x1c6   : > { %970 = vperm.xlu1 %1848, %v2389_v32   ;;  %v617_v32 = vsub.f32 1.0, %v2535_v12 }
 0x1c9   : > { %v2496_v1 = vpop.permute.xlu1 %1154 }
 0x1ca   : > { %1849 = vset.pattern.permute.xlu1 %v2088_v22 }
 0x1cb   : > { %1182 = vperm.xlu1 %1849, %v2392_v33  }
 0x1ce   : > { %v2500_v2 = vpop.permute.xlu1 %1053 }
 0x1cf   : > { %1851 = vset.pattern.permute.xlu1 %v2089_v24 }
 0x1d0   : > { %1081 = vperm.xlu1 %1851, %v2392_v33  }
 0x1d3   : > { %v2504_v3 = vpop.permute.xlu1 %649 }
 0x1d4   : > { %1852 = vset.pattern.permute.xlu1 %v2088_v22  ;;  %vm690_vm3 = vcmp.eq.s32.totalorder %v2504_v3, 1 }
 0x1d5   : > { %1186 = vperm.xlu1 %1852, %v2395_v34  }
 0x1d8   : > { %v2508_v4 = vpop.permute.xlu1 %945 }
 0x1d9   : > { %1854 = vset.pattern.permute.xlu1 %v2089_v24 }
 0x1da   : > { %1085 = vperm.xlu1 %1854, %v2395_v34   ;;  %v610_v34 = vsub.f32 1.0, %v1720_v16 }
 0x1dc   : > { %v2562_v55 = vsel %vm690_vm3, %v610_v34, 1e+09 }
 0x1dd   : > { %v2512_v5 = vpop.permute.xlu1 %1057 }
 0x1de   : > { %1855 = vset.pattern.permute.xlu1 %v2086_v0 }
 0x1df   : > { %985 = vperm.xlu1 %1855, %v2404_v36  }
 0x1e2   : > { %v2516_v6 = vpop.permute.xlu1 %652 }
 0x1e3   : > { %1856 = vset.pattern.permute.xlu1 %v2089_v24  ;;  %vm691_vm5 = vcmp.eq.s32.totalorder %v2516_v6, 1 }
 0x1e4   : > { %1089 = vperm.xlu1 %1856, %v2404_v36   ;;  %v615_v36 = vsub.f32 1.0, %v2538_v15  ;;  %v2566_v3 = vsel %vm691_vm5, %v611_v41, 1e+09 }
 0x1e5   : > { %3194 = vst [vmem:[#allocation22_spill] sm:$0xff] %v2566_v3 }
 0x1e7   : > { %v2520_v7 = vpop.permute.xlu1 %950 }
 0x1e8   : > { %1858 = vset.pattern.permute.xlu1 %v2086_v0 }
 0x1e9   : > { %990 = vperm.xlu1 %1858, %v2409_v37   ;;  %v618_v37 = vsub.f32 1.0, %v2542_v17 }
 0x1ec   : > { %v2524_v8 = vpop.permute.xlu1 %655 }
 0x1ed   : > { %1859 = vset.pattern.permute.xlu1 %v2088_v22  ;;  %vm692_vm4 = vcmp.eq.s32.totalorder %v2524_v8, 1 }
 0x1ee   : > { %1198 = vperm.xlu1 %1859, %v2426_v40   ;;  %v2564_v59 = vsel %vm692_vm4, %v612_v43, 1e+09 }
 0x1ef   : > { %v737_v12 = vmin.f32 %v2556_v48, %v2564_v59 }
 0x1f1   : > { %v2528_v9 = vpop.permute.xlu1 %955 }
 0x1f2   : > { %1860 = vset.pattern.permute.xlu1 %v2086_v0 }
 0x1f3   : > { %995 = vperm.xlu1 %1860, %v2426_v40   ;;  %v616_v40 = vsub.f32 1.0, %v530_v21 }
 0x1f6   : > { %v2532_v10 = vpop.permute.xlu1 %658 }
 0x1f7   : > { %1861 = vset.pattern.permute.xlu1 %v2088_v22  ;;  %v2544_v22 = vpop.f32.mrf.mxu1  ;;  %vm693_vm6 = vcmp.eq.s32.totalorder %v2532_v10, 1 }
 0x1f8   : > { %1202 = vperm.xlu1 %1861, %v2432_v42   ;;  %v621_v44 = vsub.f32 1.0, %v2544_v22  ;;  %v2568_v6 = vsel %vm693_vm6, %v613_v39, 1e+09 }
 0x1f9   : > { %v543_v27 = vpop.f32.mrf.mxu1  ;;  %v738_v17 = vmin.f32 %v2559_v53, %v2568_v6 }
 0x1fa   : > { %v662_v13 = vpop.permute.xlu1 %661  ;;  %v619_v45 = vsub.f32 1.0, %v543_v27 }
 0x1fb   : > { %v1732_v33 = vpop.f32.mrf.mxu1  ;;  %vm694_vm7 = vcmp.eq.s32.totalorder %v662_v13, 1 }
 0x1fc   : > { %1863 = vset.pattern.permute.xlu1 %v2089_v24  ;;  %v607_v24 = vsub.f32 1.0, %v495_v14  ;;  %v622_v49 = vsub.f32 1.0, %v1732_v33 }
 0x1fd   : > { %1101 = vperm.xlu1 %1863, %v2432_v42   ;;  %v614_v42 = vsub.f32 1.0, %v1724_v26  ;;  %v546_v46 = vpop.f32.mrf.mxu1 }
 0x1fe   : > { %v665_v0 = vpop.permute.xlu1 %664  ;;  %v2554_v47 = vsel %vm687_vm0, %v607_v24, 1e+09  ;;  %v620_v62 = vsub.f32 1.0, %v546_v46 }
 0x1ff   : > { %3193 = vst [vmem:[#allocation21_spill] sm:$0xff] %v2554_v47  ;;  %vm695_vm9 = vcmp.eq.s32.totalorder %v665_v0, 1  ;;  %v2570_v8 = vsel %vm694_vm7, %v614_v42, 1e+09  ;;  %v736_v14 = vmin.f32 %v2554_v47, %v2566_v3 }
 0x200   : > { %v2576_v13 = vsel %vm695_vm9, %v615_v36, 1e+09  ;;  %v739_v18 = vmin.f32 %v2562_v55, %v2570_v8 }
 0x201   : > { %3196 = vst [vmem:[#allocation24_spill] sm:$0xff] %v2576_v13  ;;  %v740_v20 = vmin.f32 %v736_v14, %v2576_v13 }
 0x202   : > { %v668_v19 = vpop.permute.xlu1 %667 }
 0x203   : > { %vm696_vm8 = vcmp.eq.s32.totalorder %v668_v19, 1 }
 0x204   : > { %v2572_v11 = vsel %vm696_vm8, %v616_v40, 1e+09  ;;  %v2610_v40 = vshrl.u32 %v719_v35, 7 }
 0x205   : > { %3195 = vst [vmem:[#allocation23_spill] sm:$0xff] %v2572_v11  ;;  %v741_v19 = vmin.f32 %v737_v12, %v2572_v11 }
 0x206   : > { %v671_v23 = vpop.permute.xlu1 %670  ;;  %v2620_v46 = vadd.s32 16, %v2610_v40  ;;  %v2632_v12 = vadd.s32 48, %v2610_v40  ;;  %v2635_v14 = vadd.s32 56, %v2610_v40 }
 0x207   : > { %vm697_vm10 = vcmp.eq.s32.totalorder %v671_v23, 1 }
 0x208   : > { %v2580_v15 = vsel %vm697_vm10, %v617_v32, 1e+09 }
 0x209   : > { %3197 = vst [vmem:[#allocation25_spill] sm:$0xff] %v2580_v15  ;;  %v742_v25 = vmin.f32 %v738_v17, %v2580_v15  ;;  %v2638_v17 = vadd.s32 64, %v2610_v40 }
 0x20a   : > { %v674_v28 = vpop.permute.xlu1 %673 }
 0x20b   : > { %vm698_vm11 = vcmp.eq.s32.totalorder %v674_v28, 1 }
 0x20c   : > { %v2582_v16 = vsel %vm698_vm11, %v618_v37, 1e+09 }
 0x20d   : > { %3198 = vst [vmem:[#allocation26_spill] sm:$0xff] %v2582_v16  ;;  %v743_v26 = vmin.f32 %v739_v18, %v2582_v16  ;;  %v2641_v18 = vadd.s32 72, %v2610_v40 }
 0x20e   : > { %v677_v38 = vpop.permute.xlu1 %676 }
 0x20f   : > { %vm699_vm13 = vcmp.eq.s32.totalorder %v677_v38, 1  ;;  %v2608_v38 = vpop.permute.xlu0 %975  ;;  %3204 = vst [vmem:[#allocation32_spill] sm:$0xff] %v2641_v18 }
 0x210   : > { %v2592_v21 = vsel %vm699_vm13, %v619_v45, 1e+09  ;;  %3202 = vst [vmem:[#allocation30_spill] sm:$0xff] %v2608_v38  ;;  %v2617_v45 = vadd.s32 8, %v2610_v40 }
 0x211   : > { %3200 = vst [vmem:[#allocation28_spill] sm:$0xff] %v2592_v21  ;;  %v744_v29 = vmin.f32 %v740_v20, %v2592_v21  ;;  %v2647_v20 = vadd.s32 88, %v2610_v40 }
 0x212   : > { %v680_v51 = vpop.permute.xlu1 %679 }
 0x213   : > { %vm700_vm12 = vcmp.eq.s32.totalorder %v680_v51, 1  ;;  %v2626_v51 = vadd.s32 32, %v2610_v40  ;;  %3206 = vst [vmem:[#allocation34_spill] sm:$0xff] %v2647_v20 }
 0x214   : > { %v2584_v0 = vsel %vm700_vm12, %v620_v62, 1e+09 }
 0x215   : > { %3199 = vst [vmem:[#allocation27_spill] sm:$0xff] %v2584_v0  ;;  %v745_v27 = vmin.f32 %v741_v19, %v2584_v0  ;;  %v2644_v19 = vadd.s32 80, %v2610_v40 }
 0x216   : > { %v683_v10 = vpop.permute.xlu1 %682 }
 0x217   : > { %vm701_vm14 = vcmp.eq.s32.totalorder %v683_v10, 1  ;;  %v748_v31 = vmin.f32 %v744_v29, %v745_v27  ;;  %v2629_v10 = vadd.s32 40, %v2610_v40  ;;  %3205 = vst [vmem:[#allocation33_spill] sm:$0xff] %v2644_v19  ;;  %v2657_v27 = vadd.s32 104, %v2610_v40 }
 0x218   : > { %v2594_v22 = vsel %vm701_vm14, %v621_v44, 1e+09  ;;  %v2614_v44 = vpop.permute.xlu0 %980  ;;  %v2660_v29 = vadd.s32 112, %v2610_v40 }
 0x219   : > { %3201 = vst [vmem:[#allocation29_spill] sm:$0xff] %v2594_v22  ;;  %v746_v30 = vmin.f32 %v742_v25, %v2594_v22  ;;  %3203 = vst [vmem:[#allocation31_spill] sm:$0xff] %v2614_v44 }
 0x21a   : > { %v686_v23 = vpop.permute.xlu1 %685  ;;  %3209 = vst [vmem:[#allocation37_spill] sm:$0xff] %v2657_v27  ;;  %3210 = vst [vmem:[#allocation38_spill] sm:$0xff] %v2660_v29 }
 0x21b   : > { %vm702_vm15 = vcmp.eq.s32.totalorder %v686_v23, 1 }
 0x21c   : > { %v2599_v28 = vsel %vm702_vm15, %v622_v49, 1e+09  ;;  %v2623_v49 = vadd.s32 24, %v2610_v40 }
 0x21d   : > { %v747_v24 = vmin.f32 %v743_v26, %v2599_v28  ;;  %v2654_v26 = vadd.s32 96, %v2610_v40 }
 0x21f   : > { %v749_v32 = vmin.f32 %v746_v30, %v747_v24  ;;  %v2604_v33 = vpop.permute.xlu1 %1162  ;;  %3208 = vst [vmem:[#allocation36_spill] sm:$0xff] %v2654_v26  ;;  %v2663_v30 = vadd.s32 120, %v2610_v40  ;;  %v2673_v24 = vpop.permute.xlu0 %1158 }
 0x221   : > { %v750_v34 = vmin.f32 %v748_v31, %v749_v32 }
 0x223   : > { %v751_v36 = vrot.slane %v750_v34, 4  ;;  %v2606_v37 = vpop.permute.xlu1 %1166 }
 0x225   : > { %v752_v39 = vmin.f32 %v750_v34, %v751_v36 }
 0x227   : > { %v753_v41 = vrot.slane %v752_v39, 2 }
 0x228   : > { %v2612_v42 = vpop.permute.xlu1 %1065 }
 0x229   : > { %v754_v43 = vmin.f32 %v752_v39, %v753_v41 }
 0x22b   : > { %v755_v62 = vrot.slane %v754_v43, 1 }
 0x22d   : > { %v2649_v23 = vmin.f32 %v754_v43, %v755_v62  ;;  %v2651_v25 = vpop.permute.xlu1 %960 }
 0x22f   : > { %3207 = vst [vmem:[#allocation35_spill] sm:$0xff] %v2649_v23  ;;  %vm757_vm0 = vcmp.le.f32.partialorder %v2554_v47, %v2649_v23  ;;  %vm758_vm1 = vcmp.le.f32.partialorder %v2556_v48, %v2649_v23  ;;  %vm759_vm2 = vcmp.le.f32.partialorder %v2559_v53, %v2649_v23  ;;  %vm760_vm3 = vcmp.le.f32.partialorder %v2562_v55, %v2649_v23  ;;  %v2749_v47 = vpop.permute.xlu0 %1170 }
 0x230   : > { %vm761_vm4 = vcmp.le.f32.partialorder %v2566_v3, %v2649_v23  ;;  %vm762_vm5 = vcmp.le.f32.partialorder %v2564_v59, %v2649_v23  ;;  %vm763_vm6 = vcmp.le.f32.partialorder %v2568_v6, %v2649_v23  ;;  %vm764_vm7 = vcmp.le.f32.partialorder %v2570_v8, %v2649_v23  ;;  %3212 = vst [vmem:[#allocation40_spill] sm:$0xff] %v2749_v47 }
 0x231   : > { %vm765_vm8 = vcmp.le.f32.partialorder %v2576_v13, %v2649_v23  ;;  %vm766_vm9 = vcmp.le.f32.partialorder %v2572_v11, %v2649_v23  ;;  %vm767_vm10 = vcmp.le.f32.partialorder %v2580_v15, %v2649_v23  ;;  %vm768_vm11 = vcmp.le.f32.partialorder %v2582_v16, %v2649_v23 }
 0x232   : > { %vm769_vm12 = vcmp.le.f32.partialorder %v2592_v21, %v2649_v23  ;;  %vm770_vm13 = vcmp.le.f32.partialorder %v2584_v0, %v2649_v23  ;;  %vm771_vm14 = vcmp.le.f32.partialorder %v2594_v22, %v2649_v23  ;;  %vm772_vm15 = vcmp.le.f32.partialorder %v2599_v28, %v2649_v23  ;;  %v2699_v31 = vpop.permute.xlu1 %1069 }
 0x233   : > { %3211 = vst [vmem:[#allocation39_spill] sm:$0xff] %v2699_v31  ;;  %v773_v32 = vsel %vm757_vm0, %v2610_v40, 128  ;;  %v774_v34 = vsel %vm758_vm1, %v2617_v45, 128  ;;  %v775_v35 = vsel %vm759_vm2, %v2620_v46, 128  ;;  %v776_v36 = vsel %vm760_vm3, %v2623_v49, 128  ;;  %v2769_v23 = vpop.permute.xlu0 %1174 }
 0x234   : > { %v777_v39 = vsel %vm761_vm4, %v2626_v51, 128  ;;  %v778_v41 = vsel %vm762_vm5, %v2629_v10, 128  ;;  %v779_v43 = vsel %vm763_vm6, %v2632_v12, 128  ;;  %v780_v62 = vsel %vm764_vm7, %v2635_v14, 128 }
 0x235   : > { %v781_v44 = vsel %vm765_vm8, %v2638_v17, 128  ;;  %v782_v38 = vsel %vm766_vm9, %v2641_v18, 128  ;;  %v783_v31 = vsel %vm767_vm10, %v2644_v19, 128  ;;  %v784_v3 = vsel %vm768_vm11, %v2647_v20, 128 }
 0x236   : > { %v785_v13 = vsel %vm769_vm12, %v2654_v26, 128  ;;  %v786_v11 = vsel %vm770_vm13, %v2657_v27, 128  ;;  %v787_v15 = vsel %vm771_vm14, %v2660_v29, 128  ;;  %v788_v16 = vsel %vm772_vm15, %v2663_v30, 128 }
 0x237   : > { %vm789_vm0 = vcmp.lt.s32.totalorder %v773_v32, %v777_v39  ;;  %vm791_vm1 = vcmp.lt.s32.totalorder %v774_v34, %v778_v41  ;;  %vm793_vm2 = vcmp.lt.s32.totalorder %v775_v35, %v779_v43  ;;  %vm795_vm3 = vcmp.lt.s32.totalorder %v776_v36, %v780_v62  ;;  %v2767_v21 = vpop.permute.xlu1 %965 }
 0x238   : > { %3213 = vst [vmem:[#allocation41_spill] sm:$0xff] %v2767_v21  ;;  %v790_v26 = vsel %vm789_vm0, %v773_v32, %v777_v39  ;;  %v792_v20 = vsel %vm791_vm1, %v774_v34, %v778_v41  ;;  %v794_v0 = vsel %vm793_vm2, %v775_v35, %v779_v43  ;;  %v796_v27 = vsel %vm795_vm3, %v776_v36, %v780_v62 }
 0x239   : > { %vm797_vm4 = vcmp.lt.s32.totalorder %v790_v26, %v781_v44  ;;  %vm799_vm5 = vcmp.lt.s32.totalorder %v792_v20, %v782_v38  ;;  %vm801_vm6 = vcmp.lt.s32.totalorder %v794_v0, %v783_v31  ;;  %vm803_vm7 = vcmp.lt.s32.totalorder %v796_v27, %v784_v3 }
 0x23a   : > { %v798_v22 = vsel %vm797_vm4, %v790_v26, %v781_v44  ;;  %v800_v29 = vsel %vm799_vm5, %v792_v20, %v782_v38  ;;  %v802_v19 = vsel %vm801_vm6, %v794_v0, %v783_v31  ;;  %v804_v18 = vsel %vm803_vm7, %v796_v27, %v784_v3  ;;  %v2775_v44 = vpop.permute.xlu0 %1190 }
 0x23b   : > { %vm805_vm8 = vcmp.lt.s32.totalorder %v798_v22, %v785_v13  ;;  %vm807_vm9 = vcmp.lt.s32.totalorder %v800_v29, %v786_v11  ;;  %vm809_vm10 = vcmp.lt.s32.totalorder %v802_v19, %v787_v15  ;;  %vm811_vm11 = vcmp.lt.s32.totalorder %v804_v18, %v788_v16 }
 0x23c   : > { %v806_v47 = vsel %vm805_vm8, %v798_v22, %v785_v13  ;;  %v808_v21 = vsel %vm807_vm9, %v800_v29, %v786_v11  ;;  %v810_v32 = vsel %vm809_vm10, %v802_v19, %v787_v15  ;;  %v812_v34 = vsel %vm811_vm11, %v804_v18, %v788_v16  ;;  %v2771_v35 = vpop.permute.xlu1 %1178 }
 0x23d   : > { %vm813_vm12 = vcmp.lt.s32.totalorder %v806_v47, %v808_v21  ;;  %vm815_vm13 = vcmp.lt.s32.totalorder %v810_v32, %v812_v34 }
 0x23e   : > { %v814_v36 = vsel %vm813_vm12, %v806_v47, %v808_v21  ;;  %v816_v39 = vsel %vm815_vm13, %v810_v32, %v812_v34  ;;  %v2779_v11 = vpop.permute.xlu0 %1194 }
 0x23f   : > { %vm817_vm14 = vcmp.lt.s32.totalorder %v814_v36, %v816_v39 }
 0x240   : > { %v818_v38 = vsel %vm817_vm14, %v814_v36, %v816_v39 }
 0x241   : > { %v819_v0 = vrot.slane %v818_v38, 4  ;;  %v2773_v3 = vpop.permute.xlu1 %970 }
 0x242   : > { %v1050_v22 = vpop.permute.xlu0 %1049 }
 0x243   : > { %vm820_vm15 = vcmp.lt.s32.totalorder %v818_v38, %v819_v0 }
 0x244   : > { %v821_v20 = vsel %vm820_vm15, %v818_v38, %v819_v0 }
 0x245   : > { %v822_v26 = vrot.slane %v821_v20, 2 }
 0x246   : > { %v2777_v13 = vpop.permute.xlu1 %1182  ;;  %v1062_v32 = vpop.permute.xlu0 %1061 }
 0x247   : > { %vm823_vm0 = vcmp.lt.s32.totalorder %v821_v20, %v822_v26 }
 0x248   : > { %v824_v15 = vsel %vm823_vm0, %v821_v20, %v822_v26 }
 0x249   : > { %v825_v16 = vrot.slane %v824_v15, 1 }
 0x24b   : > { %vm826_vm1 = vcmp.lt.s32.totalorder %v824_v15, %v825_v16  ;;  %v2781_v47 = vpop.permute.xlu1 %1081 }
 0x24c   : > { %v2783_v21 = vsel %vm826_vm1, %v824_v15, %v825_v16 }
 0x24d   : > { %vm843_vm2 = vcmp.eq.s32.totalorder %v2663_v30, %v2783_v21  ;;  %vm828_vm3 = vcmp.eq.s32.totalorder %v2610_v40, %v2783_v21  ;;  %vm829_vm4 = vcmp.eq.s32.totalorder %v2617_v45, %v2783_v21  ;;  %vm830_vm5 = vcmp.eq.s32.totalorder %v2620_v46, %v2783_v21 }
 0x24e   : > { %vm831_vm6 = vcmp.eq.s32.totalorder %v2623_v49, %v2783_v21  ;;  %vm832_vm7 = vcmp.eq.s32.totalorder %v2626_v51, %v2783_v21  ;;  %vm833_vm8 = vcmp.eq.s32.totalorder %v2629_v10, %v2783_v21  ;;  %v2800_v18 = vsel %vm829_vm4, 1e+09, %v2556_v48  ;;  %v3220_v51 = vld [vmem:[#allocation33_spill] sm:$0xff] }
 0x24f   : > { %v2803_v19 = vsel %vm833_vm8, 1e+09, %v2564_v59  ;;  %v2090_v45 = vmov 0.0   ;;  %v2814_v31 = vsel %vm843_vm2, 1e+09, %v2599_v28  ;;  %vm834_vm9 = vcmp.eq.s32.totalorder %v2632_v12, %v2783_v21 }
 0x250   : > { %v1660_v27 = vsel %vm828_vm3, 1.0, %v2090_v45  ;;  %v1661_v29 = vsel %vm829_vm4, 1.0, %v2090_v45  ;;  %v861_v48 = vmin.f32 %v2800_v18, %v2803_v19  ;;  %v1662_v59 = vsel %vm830_vm5, 1.0, %v2090_v45  ;;  %v2822_v10 = vpop.permute.xlu1 %1186 }
 0x251   : > { %v1663_v41 = vsel %vm831_vm6, 1.0, %v2090_v45  ;;  %v1665_v43 = vsel %vm833_vm8, 1.0, %v2090_v45  ;;  %v1003_v28 = vmul.f32 %v1660_v27, %v2454_v50  ;;  %v1004_v62 = vmul.f32 %v1661_v29, %v2465_v56 }
 0x252   : > { %v1664_v34 = vsel %vm832_vm7, 1.0, %v2090_v45  ;;  %v1105_v36 = vmul.f32 %v1661_v29, %v2472_v58  ;;  %v1205_v39 = vmul.f32 %v1660_v27, %v2458_v52  ;;  %v1206_v38 = vmul.f32 %v1661_v29, %v2469_v57 }
 0x253   : > { %v1008_v0 = vmul.f32 %v1665_v43, %v2520_v7  ;;  %v1019_v20 = vadd.f32 %v1004_v62, %v1003_v28  ;;  %v1109_v26 = vmul.f32 %v1665_v43, %v1062_v32  ;;  %v1207_v50 = vmul.f32 %v1662_v59, %v2484_v61 }
 0x254   : > { %v1208_v56 = vmul.f32 %v1663_v41, %v2496_v1  ;;  %v1221_v15 = vadd.f32 %v1206_v38, %v1205_v39  ;;  %v2847_v58 = vsel %vm830_vm5, 1e+09, %v2559_v53  ;;  %v1209_v52 = vmul.f32 %v1664_v34, %v2673_v24 }
 0x255   : > { %v2851_v57 = vsel %vm834_vm9, 1e+09, %v2568_v6  ;;  %v1666_v7 = vsel %vm834_vm9, 1.0, %v2090_v45  ;;  %v1104_v61 = vmul.f32 %v1660_v27, %v2462_v54  ;;  %v2855_v1 = vpop.permute.xlu1 %1085  ;;  %v1210_v16 = vmul.f32 %v1665_v43, %v2604_v33 }
 0x256   : > { %v1222_v12 = vadd.f32 %v1221_v15, %v1207_v50  ;;  %v862_v29 = vmin.f32 %v2847_v58, %v2851_v57  ;;  %v1106_v46 = vmul.f32 %v1662_v59, %v1050_v22  ;;  %v1009_v53 = vmul.f32 %v1666_v7, %v2528_v9  ;;  %v3218_v58 = vld [vmem:[#allocation32_spill] sm:$0xff] }
 0x257   : > { %v1211_v24 = vmul.f32 %v1666_v7, %v2606_v37  ;;  %v1107_v6 = vmul.f32 %v1663_v41, %v2500_v2  ;;  %v1120_v28 = vadd.f32 %v1105_v36, %v1104_v61  ;;  %v1108_v32 = vmul.f32 %v1664_v34, %v2512_v5  ;;  %v3219_v57 = vld [vmem:[#allocation24_spill] sm:$0xff] }
 0x258   : > { %v1223_v62 = vadd.f32 %v1222_v12, %v1208_v56  ;;  %vm835_vm10 = vcmp.eq.s32.totalorder %v2635_v14, %v2783_v21  ;;  %v2870_v54 = vsel %vm831_vm6, 1e+09, %v2562_v55  ;;  %v1005_v2 = vmul.f32 %v1662_v59, %v2480_v60  ;;  %v1074_v55 = vpop.permute.xlu0 %1073  ;;  %v3214_v60 = vld [vmem:[#allocation21_spill] sm:$0xff]  ;;  %v3215_v59 = vld [vmem:[#allocation22_spill] sm:$0xff]  ;;  %v3217_v56 = vld [vmem:[#allocation39_spill] sm:$0xff] }
 0x259   : > { %v1121_v33 = vadd.f32 %v1120_v28, %v1106_v46  ;;  %v2873_v9 = vsel %vm835_vm10, 1e+09, %v2570_v8  ;;  %v1667_v37 = vsel %vm835_vm10, 1.0, %v2090_v45  ;;  %v1110_v5 = vmul.f32 %v1666_v7, %v2612_v42  ;;  %v3221_v12 = vld [vmem:[#allocation41_spill] sm:$0xff] }
 0x25a   : > { %v1224_v22 = vadd.f32 %v1223_v62, %v1209_v52  ;;  %v863_v14 = vmin.f32 %v2870_v54, %v2873_v9  ;;  %v1006_v27 = vmul.f32 %v1663_v41, %v2492_v63  ;;  %v2881_v43 = vpop.permute.xlu1 %985  ;;  %v1007_v36 = vmul.f32 %v1664_v34, %v2508_v4  ;;  %v3216_v4 = vld [vmem:[#allocation40_spill] sm:$0xff]  ;;  %v3222_v54 = vld [vmem:[#allocation23_spill] sm:$0xff] }
 0x25b   : > { %v1122_v49 = vadd.f32 %v1121_v33, %v1107_v6  ;;  %v1010_v8 = vmul.f32 %v1667_v37, %v2651_v25  ;;  %v1020_v39 = vadd.f32 %v1019_v20, %v1005_v2  ;;  %vm836_vm11 = vcmp.eq.s32.totalorder %v2638_v17, %v2783_v21 }
 0x25c   : > { %v1225_v38 = vadd.f32 %v1224_v22, %v1210_v16  ;;  %v844_v42 = vsel %vm828_vm3, 1e+09, %v3214_v60  ;;  %v848_v63 = vsel %vm832_vm7, 1e+09, %v3215_v59  ;;  %v1212_v34 = vmul.f32 %v1667_v37, %v3216_v4  ;;  %v1078_v28 = vpop.permute.xlu0 %1077  ;;  %v3226_v60 = vld [vmem:[#allocation36_spill] sm:$0xff] }
 0x25d   : > { %v1123_v41 = vadd.f32 %v1122_v49, %v1108_v32  ;;  %v1021_v50 = vadd.f32 %v1020_v39, %v1006_v27  ;;  %v860_v25 = vmin.f32 %v844_v42, %v848_v63  ;;  %v1111_v15 = vmul.f32 %v1667_v37, %v3217_v56  ;;  %v3223_v49 = vld [vmem:[#allocation25_spill] sm:$0xff] }
 0x25e   : > { %v1226_v20 = vadd.f32 %v1225_v38, %v1211_v24  ;;  %v1668_v17 = vsel %vm836_vm11, 1.0, %v2090_v45  ;;  %vm837_vm12 = vcmp.eq.s32.totalorder %v3218_v58, %v2783_v21  ;;  %v852_v7 = vsel %vm836_vm11, 1e+09, %v3219_v57  ;;  %v3225_v38 = vld [vmem:[#allocation34_spill] sm:$0xff] }
 0x25f   : > { %v1124_v40 = vadd.f32 %v1123_v41, %v1109_v26  ;;  %v1022_v52 = vadd.f32 %v1021_v50, %v1007_v36  ;;  %vm838_vm13 = vcmp.eq.s32.totalorder %v3220_v51, %v2783_v21  ;;  %v1090_v61 = vpop.permute.xlu1 %1089  ;;  %v2903_v16 = vmin.f32 %v860_v25, %v852_v7 }
 0x260   : > { %v1011_v46 = vmul.f32 %v1668_v17, %v3221_v12  ;;  %v1112_v24 = vmul.f32 %v1668_v17, %v1074_v55  ;;  %v1669_v6 = vsel %vm837_vm12, 1.0, %v2090_v45  ;;  %v1213_v26 = vmul.f32 %v1668_v17, %v2769_v23  ;;  %v2934_v42 = vpop.permute.xlu0 %1093  ;;  %v3229_v17 = vld [vmem:[#allocation28_spill] sm:$0xff] }
 0x261   : > { %v1125_v62 = vadd.f32 %v1124_v40, %v1110_v5  ;;  %v1023_v32 = vadd.f32 %v1022_v52, %v1008_v0  ;;  %v853_v33 = vsel %vm837_vm12, 1e+09, %v3222_v54  ;;  %v1113_v37 = vmul.f32 %v1669_v6, %v1078_v28  ;;  %v3232_v28 = vld [vmem:[#allocation27_spill] sm:$0xff]  ;;  %v3233_v54 = vld [vmem:[#allocation29_spill] sm:$0xff] }
 0x262   : > { %v2912_v9 = vmin.f32 %v861_v48, %v853_v33  ;;  %v1214_v2 = vmul.f32 %v1669_v6, %v2771_v35  ;;  %v1227_v22 = vadd.f32 %v1226_v20, %v1212_v34  ;;  %v854_v0 = vsel %vm838_vm13, 1e+09, %v3223_v49  ;;  %v3224_v48 = vld [vmem:[#allocation30_spill] sm:$0xff]  ;;  %v3228_v20 = vld [vmem:[#allocation31_spill] sm:$0xff] }
 0x263   : > { %v1024_v27 = vadd.f32 %v1023_v32, %v1009_v53  ;;  %v1126_v55 = vadd.f32 %v1125_v62, %v1111_v15  ;;  %v1670_v23 = vsel %vm838_vm13, 1.0, %v2090_v45  ;;  %v1012_v18 = vmul.f32 %v1669_v6, %v2773_v3 }
 0x264   : > { %v1228_v5 = vadd.f32 %v1227_v22, %v1213_v26  ;;  %v2924_v19 = vmin.f32 %v862_v29, %v854_v0  ;;  %v1013_v35 = vmul.f32 %v1670_v23, %v3224_v48  ;;  %v991_v36 = vpop.permute.xlu1 %990  ;;  %vm839_vm14 = vcmp.eq.s32.totalorder %v3225_v38, %v2783_v21  ;;  %v3227_v29 = vld [vmem:[#allocation26_spill] sm:$0xff] }
 0x265   : > { %v1025_v53 = vadd.f32 %v1024_v27, %v1010_v8  ;;  %v1127_v39 = vadd.f32 %v1126_v55, %v1112_v24  ;;  %vm840_vm15 = vcmp.eq.s32.totalorder %v3226_v60, %v2783_v21  ;;  %v1215_v3 = vmul.f32 %v1670_v23, %v2777_v13  ;;  %v3231_v24 = vld [vmem:[#allocation38_spill] sm:$0xff] }
 0x266   : > { %v1229_v59 = vadd.f32 %v1228_v5, %v1214_v2  ;;  %v855_v63 = vsel %vm839_vm14, 1e+09, %v3227_v29  ;;  %v1671_v41 = vsel %vm839_vm14, 1.0, %v2090_v45  ;;  %v1114_v8 = vmul.f32 %v1670_v23, %v2781_v47 }
 0x267   : > { %v1026_v50 = vadd.f32 %v1025_v53, %v1011_v46  ;;  %v1128_v4 = vadd.f32 %v1127_v39, %v1113_v37  ;;  %v867_v34 = vmin.f32 %v863_v14, %v855_v63  ;;  %v1014_v56 = vmul.f32 %v1671_v41, %v3228_v20  ;;  %v2976_v37 = vld [vmem:[%s2346_s29] sm:$0xff]  ;;  %s1643_s29 = sshll.u32 %s2328_s20, 4 }
 0x268   : > { %v1230_v25 = vadd.f32 %v1229_v59, %v1215_v3  ;;  %v1216_v15 = vmul.f32 %v1671_v41, %v2822_v10  ;;  %v856_v13 = vsel %vm840_vm15, 1e+09, %v3229_v17  ;;  %v1115_v52 = vmul.f32 %v1671_v41, %v2855_v1  ;;  %v3230_v1 = vld [vmem:[#allocation37_spill] sm:$0xff]  ;;  %s3056_s25 = scalar_lea.vmem [#allocation12], %s1643_s29 }
 0x269   : > { %v1027_v58 = vadd.f32 %v1026_v50, %v1012_v18  ;;  %v1129_v40 = vadd.f32 %v1128_v4, %v1114_v8  ;;  %v1672_v47 = vsel %vm840_vm15, 1.0, %v2090_v45  ;;  %v1199_v14 = vpop.permute.xlu1 %1198  ;;  %v871_v57 = vmin.f32 %v867_v34, %v2814_v31  ;;  %v1098_v31 = vpop.permute.xlu0 %1097  ;;  %s1486_s9 = sshll.u32 %s3056_s25, 4  ;;  %s3095_s9 = int_to_ptr.vmem [resolvable:$true] %s1486_s9 }
 0x26a   : > { %v1231_v10 = vadd.f32 %v1230_v25, %v1216_v15  ;;  %v868_v7 = vmin.f32 %v2903_v16, %v856_v13  ;;  %v1015_v51 = vmul.f32 %v1672_v47, %v2881_v43  ;;  %v1217_v46 = vmul.f32 %v1672_v47, %v2775_v44  ;;  %s2003_s0 = scalar_lea.vmem %s3095_s9, 256 }
 0x26b   : > { %v1028_v12 = vadd.f32 %v1027_v58, %v1013_v35  ;;  %vm841_vm0 = vcmp.eq.s32.totalorder %v3230_v1, %v2783_v21  ;;  %vm842_vm1 = vcmp.eq.s32.totalorder %v3231_v24, %v2783_v21  ;;  %v1130_v6 = vadd.f32 %v1129_v40, %v1115_v52  ;;  %p2004_p13 = scmp.ne.s32.totalorder %s3095_s9, %s2003_s0 }
 0x26c   : > { %v1116_v16 = vmul.f32 %v1672_v47, %v1090_v61  ;;  %v857_v43 = vsel %vm841_vm0, 1e+09, %v3232_v28  ;;  %v1673_v62 = vsel %vm841_vm0, 1.0, %v2090_v45  ;;  %v858_v33 = vsel %vm842_vm1, 1e+09, %v3233_v54 }
 0x26d   : > { %v1029_v44 = vadd.f32 %v1028_v12, %v1014_v56  ;;  %v869_v32 = vmin.f32 %v2912_v9, %v857_v43  ;;  %v1016_v26 = vmul.f32 %v1673_v62, %v991_v36  ;;  %v870_v61 = vmin.f32 %v2924_v19, %v858_v33  ;;  %v1001_v36 = vpop.permute.xlu0 %1000  ;;  %p2005_p1 = pnand %p2004_p13, %p3235_p10 }
 0x26e   : > { %v1674_v2 = vsel %vm842_vm1, 1.0, %v2090_v45  ;;  %v996_v9 = vpop.permute.xlu1 %995  ;;  %v1255_v22 = vrot.slane %v2976_v37, 1  ;;  %v1218_v49 = vmul.f32 %v1673_v62, %v2779_v11  ;;  %v1232_v0 = vadd.f32 %v1231_v10, %v1217_v46 }
 0x26f   : > { %v1030_v27 = vadd.f32 %v1029_v44, %v1015_v51  ;;  %v872_v55 = vmin.f32 %v868_v7, %v869_v32  ;;  %v873_v23 = vmin.f32 %v870_v61, %v871_v57  ;;  %v1219_v5 = vmul.f32 %v1674_v2, %v1199_v14  ;;  %p2006_p3 = pneg %p2005_p1 }
 0x270   : > { %v1017_v18 = vmul.f32 %v1674_v2, %v996_v9  ;;  %v1675_v19 = vsel %vm843_vm2, 1.0, %v2090_v45  ;;  %v1131_v48 = vadd.f32 %v1130_v6, %v1116_v16  ;;  %v1252_v11 = vrot.slane %v2976_v37, 2 }
 0x271   : > { %v1031_v35 = vadd.f32 %v1030_v27, %v1016_v26  ;;  %v874_v53 = vmin.f32 %v872_v55, %v873_v23  ;;  %v1233_v39 = vadd.f32 %v1232_v0, %v1218_v49  ;;  %v1257_v38 = vmul.f32 %v1255_v22, %v2976_v37 }
 0x272   : > { %v1117_v60 = vmul.f32 %v1673_v62, %v2934_v42  ;;  %v1018_v59 = vmul.f32 %v1675_v19, %v1001_v36  ;;  %v1293_v3 = vstv %s2961_s10  ;;  %v1268_v8 = vstv %s2978_s15  ;;  %s3093_s10 = scalar_lea.hbm %s3147_s5, %s1684_s30 }
 0x273   : > { %v1032_v30 = vadd.f32 %v1031_v35, %v1017_v18  ;;  %v1203_v21 = vpop.permute.xlu1 %1202  ;;  %v875_v29 = vrot.slane %v874_v53, 4  ;;  %v1234_v63 = vadd.f32 %v1233_v39, %v1219_v5  ;;  %v1254_v4 = vmul.f32 %v1252_v11, %v2976_v37 }
 0x274   : > { %v1220_v41 = vmul.f32 %v1675_v19, %v1203_v21  ;;  %v1132_v42 = vadd.f32 %v1131_v48, %v1117_v60  ;;  %v1294_v20 = vmul.f32 %v1293_v3, %v1257_v38  ;;  %v1318_v56 = vstv %s2987_s17 }
 0x275   : > { %v1033_v50 = vadd.f32 %v1032_v30, %v1018_v59  ;;  %v876_v34 = vmin.f32 %v874_v53, %v875_v29  ;;  %v1118_v15 = vmul.f32 %v1674_v2, %v1098_v31  ;;  %v1266_v13 = vstv %s2967_s27  ;;  %s2091_s27 = smov [#allocation12]  }
 0x276   : > { %v1235_v25 = vadd.f32 %v1234_v63, %v1220_v41  ;;  %v1291_v58 = vstv %s2990_s2  ;;  %v1299_v14 = vstv %s2996_s19  ;;  %v1269_v57 = vmul.f32 %v1268_v8, %v1257_v38  ;;  %s2007_s28 = sshll.u32 %s2091_s27, 4  ;;  %s2008_s28 = int_to_ptr.vmem [resolvable:$false] %s2007_s28 }
 0x277   : > { %v1034_v17 = vrot.slane %v1033_v50, 4  ;;  %v877_v40 = vrot.slane %v876_v34, 2  ;;  %v1133_v51 = vadd.f32 %v1132_v42, %v1118_v15  ;;  %v1319_v12 = vmul.f32 %v1318_v56, %v1257_v38  ;;  %s2009_s15 = scalar_lea.vmem %s2008_s28, 512  ;;  %p2010_p9 = scmp.lt.s32.totalorder %s3095_s9, %s2008_s28 }
 0x278   : > { %v1236_v52 = vrot.slane %v1235_v25, 4  ;;  %v1102_v47 = vpop.permute.xlu1 %1101  ;;  %v1296_v24 = vrot.slane %v1294_v20, 1  ;;  %v1292_v31 = vmul.f32 %v1291_v58, %v1254_v4  ;;  %v1300_v28 = vmul.f32 %v1299_v14, %v2976_v37  ;;  %p2011_p6 = scmp.lt.s32.totalorder %s2009_s15, %s2003_s0 }
 0x279   : > { %v1035_v10 = vadd.f32 %v1034_v17, %v1033_v50  ;;  %v1119_v7 = vmul.f32 %v1675_v19, %v1102_v47  ;;  %v878_v46 = vmin.f32 %v876_v34, %v877_v40  ;;  %v1274_v43 = vstv %s3005_s16 }
 0x27a   : > { %v1237_v1 = vadd.f32 %v1236_v52, %v1235_v25  ;;  %v1267_v32 = vmul.f32 %v1266_v13, %v1254_v4  ;;  %v1316_v26 = vstv %s3007_s23  ;;  %v1271_v61 = vrot.slane %v1269_v57, 1  ;;  %p2012_p12 = por %p2011_p6, %p2010_p9 }
 0x27b   : > { %v1036_v6 = vrot.slane %v1035_v10, 2  ;;  %v1134_v16 = vadd.f32 %v1133_v51, %v1119_v7  ;;  %v879_v62 = vrot.slane %v878_v46, 1  ;;  %v1324_v2 = vstv %s3011_s26 }
 0x27c   : > { %v1238_v44 = vrot.slane %v1237_v1, 2  ;;  %v1298_v27 = vadd.f32 %v1296_v24, %v1292_v31  ;;  %v1275_v55 = vmul.f32 %v1274_v43, %v2976_v37  ;;  %v1302_v0 = vrot.slane %v1300_v28, 2  ;;  %p2013_p0 = pnand %p2012_p12, %p2006_p3 }
 0x27d   : > { %v1037_v54 = vadd.f32 %v1036_v6, %v1035_v10  ;;  %v1135_v33 = vrot.slane %v1134_v16, 4  ;;  %v880_v9 = vmin.f32 %v878_v46, %v879_v62  ;;  %v1317_v23 = vmul.f32 %v1316_v26, %v1254_v4 }
 0x27e   : > { %v1239_v22 = vadd.f32 %v1238_v44, %v1237_v1  ;;  %v1321_v5 = vrot.slane %v1319_v12, 1  ;;  %v1325_v35 = vmul.f32 %v1324_v2, %v2976_v37  ;;  %v1273_v39 = vadd.f32 %v1271_v61, %v1267_v32 }
 0x27f   : > { %v1136_v49 = vadd.f32 %v1135_v33, %v1134_v16  ;;  %v882_v18 = vmax.f32 %v880_v9, 1e-09  ;;  %v1038_v19 = vrot.slane %v1037_v54, 1  ;;  %v1277_v38 = vrot.slane %v1275_v55, 2 }
 0x280   : > { %v1240_v48 = vrot.slane %v1239_v22, 1  ;;  %v1304_v30 = vadd.f32 %v1302_v0, %v1298_v27  ;;  %v1323_v21 = vadd.f32 %v1321_v5, %v1317_v23  ;;  %v1327_v59 = vrot.slane %v1325_v35, 2 }
 0x281   : > { %v1137_v11 = vrot.slane %v1136_v49, 2  ;;  %1881 = vrcp.f32 %v882_v18  ;;  %v1039_v60 = vadd.f32 %v1038_v19, %v1037_v54  ;;  %v1279_v42 = vadd.f32 %v1277_v38, %v1273_v39 }
 0x282   : > { %v1241_v36 = vadd.f32 %v1240_v48, %v1239_v22  ;;  %v1440_v41 = vrot.slane %v1304_v30, 7  ;;  %v1329_v4 = vadd.f32 %v1327_v59, %v1323_v21  ;;  %vm1453_vm2 = vcmask 1040384  }
 0x283   : > { %v1138_v53 = vadd.f32 %v1137_v11, %v1136_v49  ;;  %vm1455_vm3 = vcmask 1041408   ;;  %vm1242_vm4 = vcmp.gt.f32.partialorder %v2976_v37, 0.0  ;;  %vm1457_vm6 = vcmask 1042432  }
 0x284   : > { %v1258_v63 = vmul.f32 %v1241_v36, %v1039_v60  ;;  %v1442_v15 = vrot.slane %v1329_v4, 6  ;;  %v1454_v17 = vsel %vm1453_vm2, %v1279_v42, %v1440_v41  ;;  %v1283_v10 = vmul.f32 %v1274_v43, %v1241_v36 }
 0x285   : > { %v1139_v29 = vrot.slane %v1138_v53, 1  ;;  %v1308_v12 = vmul.f32 %v1299_v14, %v1241_v36  ;;  %vm1243_vm5 = vcmp.gt.f32.partialorder %v1241_v36, 0.0  ;;  %vm1459_vm7 = vcmask 1043456  }
 0x286   : > { %v1280_v25 = vmul.f32 %v1266_v13, %v1258_v63  ;;  %v1330_v20 = vmul.f32 %v1316_v26, %v1258_v63  ;;  %v1305_v57 = vmul.f32 %v1291_v58, %v1258_v63  ;;  %v1456_v13 = vsel %vm1455_vm3, %v1454_v17, %v1442_v15  ;;  %v3234_v58 = vld [vmem:[#allocation35_spill] sm:$0xff]  ;;  %vm1244_vm9 = vmand %vm1242_vm4, %vm1243_vm5 }
 0x287   : > { %v1140_v50 = vadd.f32 %v1139_v29, %v1138_v53  ;;  %vm1461_vm8 = vcmask 1044480   ;;  %vm1463_vm10 = vcmask 1045504   ;;  %vm1465_vm11 = vcmask 1046528  }
 0x288   : > { %v1676_v62 = vsel %vm1244_vm9, 1.0, %v2090_v45  ;;  %vm889_vm12 = vcmp.lt.f32.partialorder %v3234_v58, 5e+08  ;;  %v1340_v61 = vrot.slane %v1304_v30, 5  ;;  %v1344_v27 = vrot.slane %v1329_v4, 5 }
 0x289   : > { %v1259_v34 = vmul.f32 %v1241_v36, %v1140_v50  ;;  %v1248_v54 = vrot.slane %v1676_v62, 7  ;;  %vm1348_vm13 = vcmask 1043459   ;;  %vm1408_vm14 = vcmask 7168  }
 0x28a   : > { %vm1410_vm15 = vcmask 15360   ;;  %vm1412_vm0 = vcmask 23552   ;;  %vm1414_vm1 = vcmask 31744   ;;  %vm1418_vm4 = vcmask 48128  }
 0x28b   : > { %v1281_v40 = vmul.f32 %v1268_v8, %v1259_v34  ;;  %v1306_v52 = vmul.f32 %v1293_v3, %v1259_v34  ;;  %v1331_v47 = vmul.f32 %v1318_v56, %v1259_v34  ;;  %v1333_v56 = vmul.f32 %v1324_v2, %v1241_v36 }
 0x28c   : > { %v1336_v2 = vrot.slane %v1279_v42, 5  ;;  %vm1420_vm5 = vcmask 56320   ;;  %vm1426_vm9 = vcmask 80896  }
 0x28d   : > { %v1282_v7 = vadd.f32 %v1281_v40, %v1280_v25  ;;  %v1307_v51 = vadd.f32 %v1306_v52, %v1305_v57  ;;  %v1332_v46 = vadd.f32 %v1331_v47, %v1330_v20 }
 0x28e   : > { %v1882_v8 = vpop.eup %1881 }
 0x28f   : > { %v3046_v1 = vadd.f32 %v1283_v10, %v1282_v7  ;;  %v3048_v3 = vadd.f32 %v1308_v12, %v1307_v51  ;;  %v884_v24 = vmul.f32 %v1882_v8, %v3234_v58  ;;  %v1334_v14 = vadd.f32 %v1333_v56, %v1332_v46 }
 0x291   : > { %v1458_v31 = vsel %vm1457_vm6, %v1456_v13, %v3046_v1  ;;  %v885_v6 = vsub.f32 1.0, %v884_v24 }
 0x292   : > { %v1460_v16 = vsel %vm1459_vm7, %v1458_v31, %v3048_v3  ;;  %vm1422_vm7 = vcmask 64512  }
 0x293   : > { %v1462_v28 = vsel %vm1461_vm8, %v1460_v16, %v1334_v14  ;;  %v886_v43 = vmax.f32 %v885_v6, 0.0  ;;  %vm1424_vm8 = vcmask 72704  }
 0x294   : > { %v1464_v44 = vsel %vm1463_vm10, %v1462_v28, %v1039_v60  ;;  %vm1428_vm10 = vcmask 89088  }
 0x295   : > { %v1466_v32 = vsel %vm1465_vm11, %v1464_v44, %v1140_v50  ;;  %v887_v26 = vmin.f32 %v886_v43, 1.0  ;;  %vm1430_vm11 = vcmask 97280  }
 0x296   : > { %1470 = vst [vmem:[%s3056_s25] sm:$0xff] %v1466_v32 }
 0x297   : > { %v888_v33 = vmul.f32 %v887_v26, %v2976_v37 }
 0x299   : > { %v890_v9 = vsel %vm889_vm12, %v888_v33, 0.0  ;;  %vm1432_vm12 = vcmask 105472  }
 0x29a   : > { %v1250_v22 = vmul.f32 %v1248_v54, %v890_v9  ;;  %v1445_v19 = vrot.slane %v890_v9, 3 }
 0x29c   : > { %v1342_v55 = vmul.f32 %v1340_v61, %v1250_v22  ;;  %v1338_v49 = vmul.f32 %v1336_v2, %v1250_v22  ;;  %v1346_v23 = vmul.f32 %v1344_v27, %v1250_v22  ;;  %v1448_v37 = vrot.slane %v1250_v22, 2 }
 0x29d   : > { %v1393_v42 = vmul.f32 %v3046_v1, %v1250_v22  ;;  %v1401_v20 = vmul.f32 %v1334_v14, %v1250_v22  ;;  %v1397_v40 = vmul.f32 %v3048_v3, %v1250_v22  ;;  %v1405_v47 = vsel %vm1348_vm13, %v1250_v22, 0.0 }
 0x29e   : > { %v1387_v45 = vsel %vm1348_vm13, %v1342_v55, 0.0  ;;  %v1384_v0 = vsel %vm1348_vm13, %v1338_v49, 0.0  ;;  %v1347_v5 = vmul.f32 %v1338_v49, %v3046_v1  ;;  %v1390_v48 = vsel %vm1348_vm13, %v1346_v23, 0.0 }
 0x29f   : > { %1388 = vadd.xlane.f32.xlu1 %v1387_v45  ;;  %1385 = vadd.xlane.f32.xlu0 %v1384_v0  ;;  %v1352_v35 = vmul.f32 %v1338_v49, %v3048_v3  ;;  %v1364_v11 = vmul.f32 %v1342_v55, %v3048_v3  ;;  %v3069_v36 = vsel %vm1453_vm2, %v1445_v19, %v1448_v37  ;;  %v1394_v34 = vsel %vm1348_vm13, %v1393_v42, 0.0 }
 0x2a0   : > { %v1349_v18 = vsel %vm1348_vm13, %v1347_v5, 0.0  ;;  %v1356_v38 = vmul.f32 %v1338_v49, %v1334_v14  ;;  %v1372_v60 = vmul.f32 %v1346_v23, %v3046_v1  ;;  %v1360_v59 = vmul.f32 %v1342_v55, %v3046_v1 }
 0x2a1   : > { %v1353_v53 = vsel %vm1348_vm13, %v1352_v35, 0.0  ;;  %v1365_v39 = vsel %vm1348_vm13, %v1364_v11, 0.0  ;;  %v1380_v29 = vmul.f32 %v1346_v23, %v1334_v14  ;;  %v1368_v50 = vmul.f32 %v1342_v55, %v1334_v14 }
 0x2a2   : > { %v1357_v30 = vsel %vm1348_vm13, %v1356_v38, 0.0  ;;  %v1373_v21 = vsel %vm1348_vm13, %v1372_v60, 0.0  ;;  %v1361_v63 = vsel %vm1348_vm13, %v1360_v59, 0.0  ;;  %v1376_v25 = vmul.f32 %v1346_v23, %v3048_v3 }
 0x2a3   : > { %1391 = vadd.xlane.f32.xlu0 %v1390_v48  ;;  %1350 = vadd.xlane.f32.xlu1 %v1349_v18  ;;  %v1381_v41 = vsel %vm1348_vm13, %v1380_v29, 0.0  ;;  %v1369_v4 = vsel %vm1348_vm13, %v1368_v50, 0.0  ;;  %v1402_v17 = vsel %vm1348_vm13, %v1401_v20, 0.0  ;;  %v1398_v52 = vsel %vm1348_vm13, %v1397_v40, 0.0 }
 0x2a4   : > { %v1377_v15 = vsel %vm1348_vm13, %v1376_v25, 0.0  ;;  %vm1416_vm2 = vcmask 39936   ;;  %vm1434_vm13 = vcmask 113664  }
 0x2a7   : > { %1354 = vadd.xlane.f32.xlu0 %v1353_v53  ;;  %1366 = vadd.xlane.f32.xlu1 %v1365_v39 }
 0x2ab   : > { %1358 = vadd.xlane.f32.xlu0 %v1357_v30  ;;  %1374 = vadd.xlane.f32.xlu1 %v1373_v21 }
 0x2af   : > { %1362 = vadd.xlane.f32.xlu0 %v1361_v63  ;;  %1382 = vadd.xlane.f32.xlu1 %v1381_v41 }
 0x2b3   : > { %1370 = vadd.xlane.f32.xlu0 %v1369_v4  ;;  %1395 = vadd.xlane.f32.xlu1 %v1394_v34 }
 0x2b7   : > { %1378 = vadd.xlane.f32.xlu0 %v1377_v15  ;;  %1403 = vadd.xlane.f32.xlu1 %v1402_v17 }
 0x2bb   : > { %1399 = vadd.xlane.f32.xlu0 %v1398_v52 }
 0x2bf   : > { %1406 = vadd.xlane.f32.xlu0 %v1405_v47 }
 0x328   : > { %v1389_v57 = vpop.xlane.xlu1 %1388  ;;  %v1386_v10 = vpop.xlane.xlu0 %1385 }
 0x32c   : > { %v1392_v7 = vpop.xlane.xlu0 %1391  ;;  %v1351_v51 = vpop.xlane.xlu1 %1350 }
 0x330   : > { %v1355_v12 = vpop.xlane.xlu0 %1354  ;;  %v1367_v46 = vpop.xlane.xlu1 %1366 }
 0x331   : > { %v1409_v1 = vsel %vm1408_vm14, %v1351_v51, %v1355_v12  ;;  %vm1436_vm14 = vcmask 121856  }
 0x334   : > { %v1359_v13 = vpop.xlane.xlu0 %1358  ;;  %v1375_v8 = vpop.xlane.xlu1 %1374 }
 0x335   : > { %v1411_v3 = vsel %vm1410_vm15, %v1409_v1, %v1359_v13  ;;  %vm1438_vm15 = vcmask 130048  }
 0x338   : > { %v1363_v56 = vpop.xlane.xlu0 %1362  ;;  %v1383_v24 = vpop.xlane.xlu1 %1382 }
 0x339   : > { %v1413_v58 = vsel %vm1412_vm0, %v1411_v3, %v1363_v56 }
 0x33a   : > { %v1415_v31 = vsel %vm1414_vm1, %v1413_v58, %v1367_v46 }
 0x33c   : > { %v1371_v14 = vpop.xlane.xlu0 %1370  ;;  %v1396_v43 = vpop.xlane.xlu1 %1395 }
 0x33d   : > { %v1417_v6 = vsel %vm1416_vm2, %v1415_v31, %v1371_v14 }
 0x33e   : > { %v1419_v28 = vsel %vm1418_vm4, %v1417_v6, %v1375_v8 }
 0x340   : > { %v1379_v16 = vpop.xlane.xlu0 %1378  ;;  %v1404_v2 = vpop.xlane.xlu1 %1403 }
 0x341   : > { %v1421_v62 = vsel %vm1420_vm5, %v1419_v28, %v1379_v16 }
 0x342   : > { %v1423_v44 = vsel %vm1422_vm7, %v1421_v62, %v1383_v24 }
 0x343   : > { %v1425_v32 = vsel %vm1424_vm8, %v1423_v44, %v1386_v10 }
 0x344   : > { %v1400_v26 = vpop.xlane.xlu0 %1399  ;;  %v1427_v54 = vsel %vm1426_vm9, %v1425_v32, %v1389_v57 }
 0x345   : > { %v1429_v33 = vsel %vm1428_vm10, %v1427_v54, %v1392_v7 }
 0x346   : > { %v1431_v61 = vsel %vm1430_vm11, %v1429_v33, %v1396_v43 }
 0x347   : > { %v1433_v9 = vsel %vm1432_vm12, %v1431_v61, %v1400_v26 }
 0x348   : > { %v1407_v22 = vpop.xlane.xlu0 %1406  ;;  %v1435_v27 = vsel %vm1434_vm13, %v1433_v9, %v1404_v2 }
 0x349   : > { %v1437_v55 = vsel %vm1436_vm14, %v1435_v27, %v1407_v22 }
 0x34a   : > { %v1439_v49 = vsel %vm1438_vm15, %v1437_v55, 0.0 }
 0x34b   : > { %v1451_v45 = vrot.slane %v1439_v49, 1 }
 0x34d   : > { %v1468_v0 = vsel %vm1455_vm3, %v3069_v36, %v1451_v45 }
 0x34e   : > { %v1469_v23 = vsel %vm1457_vm6, %v1468_v0, 0.0 }
 0x34f   : > { %1471 = vst [vmem:[%s3056_s25 + $0x8] sm:$0xff] %v1469_v23 }
 0x350   : > { %2016 = shalt.err (!%p2013_p0)
}
 0x351   : > { %s2017_s8 = scalar_lea.hbm %s3093_s10, 256  ;;  %s2021_s19 = scalar_lea.hbm %s3147_s5, 512 }
 0x352   : > { %p2018_p11 = scmp.ne.s32.totalorder %s3093_s10, %s2017_s8  ;;  %p2022_p7 = scmp.lt.s32.totalorder %s3093_s10, %s3147_s5 }
 0x353   : > { %p2023_p8 = scmp.lt.s32.totalorder %s2021_s19, %s2017_s8 }
 0x354   : > { %p2019_p4 = pnand %p2018_p11, %p3235_p10 }
 0x355   : > { %p2024_p2 = por %p2023_p8, %p2022_p7 }
 0x356   : > { %p2020_p5 = pneg %p2019_p4 }
 0x358   : > { %p2025_p13 = pnand %p2024_p2, %p2020_p5 }
 0x35a   : > { %2028 = shalt.err (!%p2025_p13)
}
 0x35b   : > { %s2092_s11 = smov 128   ;;  %s2093_s16 = smov 8  }
 0x35c   : > { %1757 = dma.vmem_to_hbm [thread:$0]  (%p3235_p10), %s3095_s9, 256, %s3093_s10, %s1473_s13, %s2092_s11, %s2092_s11, %s2093_s16  }
 0x35d PF: > { %s1501_s23 = sand.u32 1, %s2065_s21   ;;  %p3236_p1 = scmp.ne.s32.totalorder %s3182_s7, 0 }
 0x35e   : > { %p3237_p3 = scmp.ge.s32.totalorder %s2077_s24, 2  ;;  %s1502_s26 = scalar_lea.sflag [#allocation6], %s1501_s23 }
 0x360   : > { %p1773_p9 = pnand %p3237_p3, %p3236_p1 }
 0x362   : > { %p1774_p6 = pneg %p1773_p9 }
 0x364   : > { %2060 = dma.done.wait (%p1774_p6), %s1502_s26, 256  }
 0x365   : > { %2062 = vsyncadd (%p1774_p6), %s1502_s26, 4294967040  ;;  %s3238_s24 = sld [smem:[#allocation19_spill]]  ;;  %s3241_s21 = smov %s2069_s22 }
 0x366   : > { %s3239_s29 = sld [smem:[#allocation18_spill]] }
 0x367   : > { %s3240_s23 = sld [smem:[#allocation20_spill]] }
 0x36b   : > { %p28_p12 = scmp.ge.s32.totalorder %s3238_s24, 4  }
 0x36c   : > { %s3242_s22 = smov %s3239_s29 }
 0x36d   :  { %30 = sbr.rel (!%p28_p12) target bundleno = 16 (0x10), region = 118 }
 0x372   :  { %1507 = vsyncpa [#allocation5], 1 }
 0x373   :  { %1509 = vsyncpa [#allocation5 + $0x1], 1 }
 0x374   :  { %1510 = vsyncpa [#allocation8], 1 }
 0x375   :  { %1512 = vsyncpa [#allocation8 + $0x1], 1 }
 0x376   :  { %1513 = vsyncpa [#allocation11], 1 }
 0x377   :  { %1515 = vsyncpa [#allocation11 + $0x1], 1 }
 0x378   :  { %1516 = vsyncpa [#allocation6], 1 }
 0x379   :  { %1518 = vsyncpa [#allocation6 + $0x1], 1 }

</bundles_post_ra>
